<compile_context>
chip_gen: v5e
topology: v5e:2x2
jax: 0.10.0
libtpu: 0.0.40
codegen_flags: <defaults>
</compile_context>

<pallas_src>
from functools import partial

import jax
import jax.numpy as jnp
from jax import lax
from jax.experimental import pallas as pl
from jax.experimental.pallas import tpu as pltpu


def _pick_row_tile(H, W, Cout, acc_budget_bytes=128 * 1024):
    """Largest row tile TH dividing H whose (TH*W, Cout) f32 accumulator fits budget."""
    max_rows = max(1, acc_budget_bytes // max(1, W * Cout * 4))
    th = min(H, max_rows)
    while H % th:
        th -= 1
    return th


def _conv_block_kernel(*refs, use_act, neg_slope, fuse_residual, row_tile):
    """One (n, d) grid step: one full (H, W, Cout) output plane, row-tiled.

    refs: x0, x1, x2   padded depth planes d, d+1, d+2, each (H+2, W+2, Cin)
          w            (3, 9*Cin, Cout)   kd-major; contraction index = (kh*3+kw)*Cin+ci
          b            (1, Cout)
          [residual]   (H, W, Cout)       only for the last ConvBlock
          out          (H, W, Cout)
          op_buf       (TH*W, 9*Cin)      VMEM im2col scratch for one row tile
    """
    if fuse_residual:
        x0_ref, x1_ref, x2_ref, w_ref, b_ref, res_ref, o_ref, op_ref = refs
    else:
        x0_ref, x1_ref, x2_ref, w_ref, b_ref, o_ref, op_ref = refs
        res_ref = None

    H, W, Cout = o_ref.shape
    Cin = x0_ref.shape[-1]
    TH = row_tile
    n_tiles = H // TH

    bias = b_ref[...].astype(jnp.float32)                      # (1, Cout)

    def tile_body(t, carry):
        row0 = pl.multiple_of(t * TH, TH)
        acc = jnp.zeros((TH * W, Cout), dtype=jnp.float32)
        for kd, plane_ref in enumerate((x0_ref, x1_ref, x2_ref)):
            strip = plane_ref[pl.ds(row0, TH + 2), :, :]        # (TH+2, W+2, Cin)
            # Pack the 9 (kh, kw) taps into one (TH*W, 9*Cin) operand so the MXU
            # contraction depth is 9*Cin instead of Cin.
            for kh in range(3):
                for kw in range(3):
                    p = kh * 3 + kw
                    tap = strip[kh:kh + TH, kw:kw + W, :].reshape(TH * W, Cin)
                    op_ref[:, p * Cin:(p + 1) * Cin] = tap
            acc = acc + jnp.dot(op_ref[...], w_ref[kd],
                                preferred_element_type=jnp.float32)

        # Epilogue in f32 (v5e-friendly): bias, activation, fused residual add.
        acc = acc + bias
        if use_act:
            if neg_slope == 0.0:
                acc = jnp.maximum(acc, 0.0)                     # ReLU
            else:
                acc = jnp.where(acc >= 0.0, acc, neg_slope * acc)  # LeakyReLU(0.2)
        if res_ref is not None:
            res = res_ref[pl.ds(row0, TH), :, :].reshape(TH * W, Cout)
            acc = acc + res.astype(jnp.float32)
        o_ref[pl.ds(row0, TH), :, :] = acc.reshape(TH, W, Cout).astype(o_ref.dtype)
        return carry

    lax.fori_loop(0, n_tiles, tile_body, 0)


def conv_block_ndhwc(x, weight, bias, *, discriminator=False, use_act=True,
                     residual=None, compute_dtype=jnp.bfloat16, out_dtype=None):
    """ConvBlock forward in NDHWC.

    x: [N, D, H, W, Cin], weight: [Cout, Cin, 3, 3, 3] (PyTorch OIDHW), bias: [Cout].
    kernel_size=3, stride=1, padding=1.  `residual` (NDHWC, output-shaped) is added
    after the activation (fuses the ResidualBlock skip into the last conv).
    """
    N, D, H, W, Cin = x.shape
    Cout = weight.shape[0]
    out_dtype = x.dtype if out_dtype is None else out_dtype
    cdt = jnp.dtype(compute_dtype)

    # TODO(synk): this pad(+cast) is a full-volume HBM round trip per conv; writing
    # each conv's output straight into a pre-padded buffer would remove it.
    xp = jnp.pad(x.astype(compute_dtype),
                 ((0, 0), (1, 1), (1, 1), (1, 1), (0, 0)))

    # OIDHW -> (kD, kH, kW, Cin, Cout) -> (3, 9*Cin, Cout); within a depth tap the
    # contraction index is (kh*3 + kw)*Cin + ci, matching the kernel's operand packing.
    w_taps = jnp.transpose(weight, (2, 3, 4, 1, 0)).reshape(3, 9 * Cin, Cout)
    w_taps = w_taps.astype(compute_dtype)
    b_mat = bias.reshape(1, Cout).astype(jnp.float32)

    # Three shifted views of the padded depth axis (d, d+1, d+2) = the 3 depth taps.
    def plane_spec(kd):
        return pl.BlockSpec((None, None, H + 2, W + 2, Cin),
                            lambda n, d, kd=kd: (n, d + kd, 0, 0, 0))

    in_specs = [plane_spec(0), plane_spec(1), plane_spec(2),
                pl.BlockSpec((3, 9 * Cin, Cout), lambda n, d: (0, 0, 0)),  # resident
                pl.BlockSpec((1, Cout), lambda n, d: (0, 0))]              # resident
    inputs = [xp, xp, xp, w_taps, b_mat]

    fuse_residual = residual is not None
    res_itm = 0
    if fuse_residual:
        in_specs.append(pl.BlockSpec((None, None, H, W, Cout),
                                     lambda n, d: (n, d, 0, 0, 0)))
        inputs.append(residual)
        res_itm = jnp.dtype(residual.dtype).itemsize

    TH = _pick_row_tile(H, W, Cout)

    itm = cdt.itemsize
    out_itm = jnp.dtype(out_dtype).itemsize
    flops = 2 * N * D * H * W * 27 * Cin * Cout
    bytes_accessed = (3 * N * D * (H + 2) * (W + 2) * Cin * itm   # depth-halo reads
                      + 27 * Cin * Cout * itm                     # weights
                      + N * D * H * W * Cout * (out_itm + res_itm))

    # Generation-aware VMEM budget: double-buffered blocks + im2col scratch with
    # headroom, floored at 32 MiB (>= every generation's default scoped limit) and
    # capped at 64 MiB so it is valid on v7x's 64 MiB physical VMEM.
    plane_b = (H + 2) * (W + 2) * Cin * itm
    block_bytes = (3 * plane_b + 27 * Cin * Cout * itm + Cout * 4
                   + H * W * Cout * (out_itm + res_itm))
    working_set = 2 * block_bytes + TH * W * 9 * Cin * itm
    vmem_limit = int(min(max(2 * working_set, 32 * 1024 * 1024), 64 * 1024 * 1024))

    kernel = partial(_conv_block_kernel,
                     use_act=use_act,
                     neg_slope=0.2 if discriminator else 0.0,
                     fuse_residual=fuse_residual,
                     row_tile=TH)

    return pl.pallas_call(
        kernel,
        out_shape=jax.ShapeDtypeStruct((N, D, H, W, Cout), out_dtype),
        grid_spec=pltpu.PrefetchScalarGridSpec(
            num_scalar_prefetch=0,
            grid=(N, D),
            in_specs=in_specs,
            out_specs=pl.BlockSpec((None, None, H, W, Cout),
                                   lambda n, d: (n, d, 0, 0, 0)),
            scratch_shapes=[pltpu.VMEM((TH * W, 9 * Cin), compute_dtype)],
        ),
        compiler_params=pltpu.CompilerParams(
            dimension_semantics=("parallel", "parallel"),
            vmem_limit_bytes=vmem_limit,
        ),
        cost_estimate=pl.CostEstimate(flops=flops, transcendentals=0,
                                      bytes_accessed=bytes_accessed),
    )(*inputs)


def residual_block(x, params, *, compute_dtype=jnp.bfloat16):
    """ResidualBlock forward.  x: [N, C, D, H, W] (NCDHW, PyTorch layout).
    params: list of 4 (weight [C, C, 3, 3, 3], bias [C]) tuples."""
    x_ndhwc = jnp.transpose(x, (0, 2, 3, 4, 1))       # transpose once, not per conv
    h = x_ndhwc
    n_blocks = len(params)
    for i, (w, b) in enumerate(params):
        last = i == n_blocks - 1
        h = conv_block_ndhwc(
            h, w, b,
            use_act=True,                             # all four ConvBlocks use ReLU
            residual=x_ndhwc if last else None,       # fuse `out + x` into last conv
            compute_dtype=compute_dtype,
            out_dtype=x.dtype if last else compute_dtype)
    return jnp.transpose(h, (0, 4, 1, 2, 3))          # back to NCDHW


def _reference_residual_block(x, params):
    h = x
    for w, b in params:
        h = lax.conv_general_dilated(
            h, w, window_strides=(1, 1, 1),
            padding=((1, 1), (1, 1), (1, 1)),
            dimension_numbers=("NCDHW", "OIDHW", "NCDHW"),
        ) + b.reshape(1, -1, 1, 1, 1)
        h = jnp.maximum(h, 0.0)
    return h + x


if __name__ == "__main__":
    key = jax.random.PRNGKey(0)
    keys = jax.random.split(key, 9)

    N, C = 2, 4
    D = H = W = 8

    x = jax.random.normal(keys[0], (N, C, D, H, W), dtype=jnp.float32)

    # Deterministic Conv3d-style init: U(-1/sqrt(fan_in), 1/sqrt(fan_in)).
    fan_in = C * 3 * 3 * 3
    bound = 1.0 / (fan_in ** 0.5)
    params = []
    for i in range(4):
        w = jax.random.uniform(keys[1 + 2 * i], (C, C, 3, 3, 3),
                               minval=-bound, maxval=bound, dtype=jnp.float32)
        b = jax.random.uniform(keys[2 + 2 * i], (C,),
                               minval=-bound, maxval=bound, dtype=jnp.float32)
        params.append((w, b))

    ref = _reference_residual_block(x, params)

    # f32-operand run: tight numerical check of the kernel itself.
    out_f32 = jax.block_until_ready(
        residual_block(x, params, compute_dtype=jnp.float32))
    assert out_f32.shape == (N, C, D, H, W), out_f32.shape
    assert jnp.allclose(out_f32, ref, atol=1e-4, rtol=1e-4), \
        float(jnp.max(jnp.abs(out_f32 - ref)))

    # bf16-operand run (default / perf path): f32 accumulation, loose tolerance.
    out_bf16 = jax.block_until_ready(residual_block(x, params))
    assert out_bf16.dtype == x.dtype
    assert jnp.allclose(out_bf16, ref, atol=7e-2, rtol=7e-2), \
        float(jnp.max(jnp.abs(out_bf16 - ref)))

    print("KERNEL_OK")
</pallas_src>

<mosaic_0001>
module attributes {stable_mosaic.version = 11 : i64} {
  func.func @_conv_block_kernel(%arg0: i32, %arg1: i32, %arg2: memref<1x1x10x10x4xf32, #tpu.memory_space<vmem>>, %arg3: memref<1x1x10x10x4xf32, #tpu.memory_space<vmem>>, %arg4: memref<1x1x10x10x4xf32, #tpu.memory_space<vmem>>, %arg5: memref<3x36x4xf32, #tpu.memory_space<vmem>>, %arg6: memref<1x4xf32, #tpu.memory_space<vmem>>, %arg7: memref<1x1x8x8x4xf32, #tpu.memory_space<vmem>>, %arg8: memref<64x36xf32, #tpu.memory_space<vmem>>) attributes {dimension_semantics = [#tpu.dimension_semantics<parallel>, #tpu.dimension_semantics<parallel>], iteration_bounds = array<i64: 2, 8>, scalar_prefetch = 0 : i64, scratch_operands = 1 : i64, tpu.core_type = #tpu.core_type<tc>, window_params = [{transform_indices = @transform_0, window_bounds = array<i64: 1, 1, 10, 10, 4>}, {transform_indices = @transform_1, window_bounds = array<i64: 1, 1, 10, 10, 4>}, {transform_indices = @transform_2, window_bounds = array<i64: 1, 1, 10, 10, 4>}, {pipeline_mode = #tpu.pipeline_mode<synchronous>, transform_indices = @transform_3, window_bounds = array<i64: 3, 36, 4>}, {pipeline_mode = #tpu.pipeline_mode<synchronous>, transform_indices = @transform_4, window_bounds = array<i64: 1, 4>}, {transform_indices = @transform_5, window_bounds = array<i64: 1, 1, 8, 8, 4>}]} {
    %c0 = arith.constant 0 : index
    %c0_0 = arith.constant 0 : index
    %0 = vector.load %arg6[%c0, %c0_0] : memref<1x4xf32, #tpu.memory_space<vmem>>, vector<1x4xf32>
    %c0_i32 = arith.constant 0 : i32
    %c8_i32 = arith.constant 8 : i32
    %1 = arith.muli %c0_i32, %c8_i32 : i32
    %2 = tpu.assume_multiple %1, 8 : i32
    %cst = arith.constant 0.000000e+00 : f32
    %3 = vector.broadcast %cst : f32 to vector<64x4xf32>
    %c0_1 = arith.constant 0 : index
    %c0_2 = arith.constant 0 : index
    %4 = arith.index_cast %2 : i32 to index
    %c0_3 = arith.constant 0 : index
    %c0_4 = arith.constant 0 : index
    %5 = vector.load %arg2[%c0_1, %c0_2, %4, %c0_3, %c0_4] : memref<1x1x10x10x4xf32, #tpu.memory_space<vmem>>, vector<1x1x10x10x4xf32>
    %6 = vector.shape_cast %5 : vector<1x1x10x10x4xf32> to vector<10x10x4xf32>
    %7 = vector.extract_strided_slice %6 {offsets = [0, 0, 0], sizes = [8, 8, 4], strides = [1, 1, 1]} : vector<10x10x4xf32> to vector<8x8x4xf32>
    %8 = vector.shape_cast %7 : vector<8x8x4xf32> to vector<64x4xf32>
    %c0_5 = arith.constant 0 : index
    %c0_6 = arith.constant 0 : index
    %9 = vector.load %arg8[%c0_5, %c0_6] : memref<64x36xf32, #tpu.memory_space<vmem>>, vector<64x4xf32>
    tpu.vector_store %arg8[%c0_5, %c0_6], %8 {strides = array<i32>} : memref<64x36xf32, #tpu.memory_space<vmem>>, vector<64x4xf32>,
    %10 = vector.extract_strided_slice %6 {offsets = [0, 1, 0], sizes = [8, 8, 4], strides = [1, 1, 1]} : vector<10x10x4xf32> to vector<8x8x4xf32>
    %11 = vector.shape_cast %10 : vector<8x8x4xf32> to vector<64x4xf32>
    %c0_7 = arith.constant 0 : index
    %c4 = arith.constant 4 : index
    %12 = vector.load %arg8[%c0_7, %c4] : memref<64x36xf32, #tpu.memory_space<vmem>>, vector<64x4xf32>
    tpu.vector_store %arg8[%c0_7, %c4], %11 {strides = array<i32>} : memref<64x36xf32, #tpu.memory_space<vmem>>, vector<64x4xf32>,
    %13 = vector.extract_strided_slice %6 {offsets = [0, 2, 0], sizes = [8, 8, 4], strides = [1, 1, 1]} : vector<10x10x4xf32> to vector<8x8x4xf32>
    %14 = vector.shape_cast %13 : vector<8x8x4xf32> to vector<64x4xf32>
    %c0_8 = arith.constant 0 : index
    %c8 = arith.constant 8 : index
    %15 = vector.load %arg8[%c0_8, %c8] : memref<64x36xf32, #tpu.memory_space<vmem>>, vector<64x4xf32>
    tpu.vector_store %arg8[%c0_8, %c8], %14 {strides = array<i32>} : memref<64x36xf32, #tpu.memory_space<vmem>>, vector<64x4xf32>,
    %16 = vector.extract_strided_slice %6 {offsets = [1, 0, 0], sizes = [8, 8, 4], strides = [1, 1, 1]} : vector<10x10x4xf32> to vector<8x8x4xf32>
    %17 = vector.shape_cast %16 : vector<8x8x4xf32> to vector<64x4xf32>
    %c0_9 = arith.constant 0 : index
    %c12 = arith.constant 12 : index
    %18 = vector.load %arg8[%c0_9, %c12] : memref<64x36xf32, #tpu.memory_space<vmem>>, vector<64x4xf32>
    tpu.vector_store %arg8[%c0_9, %c12], %17 {strides = array<i32>} : memref<64x36xf32, #tpu.memory_space<vmem>>, vector<64x4xf32>,
    %19 = vector.extract_strided_slice %6 {offsets = [1, 1, 0], sizes = [8, 8, 4], strides = [1, 1, 1]} : vector<10x10x4xf32> to vector<8x8x4xf32>
    %20 = vector.shape_cast %19 : vector<8x8x4xf32> to vector<64x4xf32>
    %c0_10 = arith.constant 0 : index
    %c16 = arith.constant 16 : index
    %21 = vector.load %arg8[%c0_10, %c16] : memref<64x36xf32, #tpu.memory_space<vmem>>, vector<64x4xf32>
    tpu.vector_store %arg8[%c0_10, %c16], %20 {strides = array<i32>} : memref<64x36xf32, #tpu.memory_space<vmem>>, vector<64x4xf32>,
    %22 = vector.extract_strided_slice %6 {offsets = [1, 2, 0], sizes = [8, 8, 4], strides = [1, 1, 1]} : vector<10x10x4xf32> to vector<8x8x4xf32>
    %23 = vector.shape_cast %22 : vector<8x8x4xf32> to vector<64x4xf32>
    %c0_11 = arith.constant 0 : index
    %c20 = arith.constant 20 : index
    %24 = vector.load %arg8[%c0_11, %c20] : memref<64x36xf32, #tpu.memory_space<vmem>>, vector<64x4xf32>
    tpu.vector_store %arg8[%c0_11, %c20], %23 {strides = array<i32>} : memref<64x36xf32, #tpu.memory_space<vmem>>, vector<64x4xf32>,
    %25 = vector.extract_strided_slice %6 {offsets = [2, 0, 0], sizes = [8, 8, 4], strides = [1, 1, 1]} : vector<10x10x4xf32> to vector<8x8x4xf32>
    %26 = vector.shape_cast %25 : vector<8x8x4xf32> to vector<64x4xf32>
    %c0_12 = arith.constant 0 : index
    %c24 = arith.constant 24 : index
    %27 = vector.load %arg8[%c0_12, %c24] : memref<64x36xf32, #tpu.memory_space<vmem>>, vector<64x4xf32>
    tpu.vector_store %arg8[%c0_12, %c24], %26 {strides = array<i32>} : memref<64x36xf32, #tpu.memory_space<vmem>>, vector<64x4xf32>,
    %28 = vector.extract_strided_slice %6 {offsets = [2, 1, 0], sizes = [8, 8, 4], strides = [1, 1, 1]} : vector<10x10x4xf32> to vector<8x8x4xf32>
    %29 = vector.shape_cast %28 : vector<8x8x4xf32> to vector<64x4xf32>
    %c0_13 = arith.constant 0 : index
    %c28 = arith.constant 28 : index
    %30 = vector.load %arg8[%c0_13, %c28] : memref<64x36xf32, #tpu.memory_space<vmem>>, vector<64x4xf32>
    tpu.vector_store %arg8[%c0_13, %c28], %29 {strides = array<i32>} : memref<64x36xf32, #tpu.memory_space<vmem>>, vector<64x4xf32>,
    %31 = vector.extract_strided_slice %6 {offsets = [2, 2, 0], sizes = [8, 8, 4], strides = [1, 1, 1]} : vector<10x10x4xf32> to vector<8x8x4xf32>
    %32 = vector.shape_cast %31 : vector<8x8x4xf32> to vector<64x4xf32>
    %c0_14 = arith.constant 0 : index
    %c32 = arith.constant 32 : index
    %33 = vector.load %arg8[%c0_14, %c32] : memref<64x36xf32, #tpu.memory_space<vmem>>, vector<64x4xf32>
    tpu.vector_store %arg8[%c0_14, %c32], %32 {strides = array<i32>} : memref<64x36xf32, #tpu.memory_space<vmem>>, vector<64x4xf32>,
    %c0_15 = arith.constant 0 : index
    %c0_16 = arith.constant 0 : index
    %34 = vector.load %arg8[%c0_15, %c0_16] : memref<64x36xf32, #tpu.memory_space<vmem>>, vector<64x36xf32>
    %c0_17 = arith.constant 0 : index
    %c0_18 = arith.constant 0 : index
    %c0_19 = arith.constant 0 : index
    %35 = vector.load %arg5[%c0_17, %c0_18, %c0_19] : memref<3x36x4xf32, #tpu.memory_space<vmem>>, vector<1x36x4xf32>
    %36 = vector.shape_cast %35 : vector<1x36x4xf32> to vector<36x4xf32>
    %cst_20 = arith.constant dense<0.000000e+00> : vector<64x4xf32>
    %37 = tpu.matmul %34, %36, %cst_20 {dimension_numbers = #tpu.dot_dimension_numbers<[1], [0], [0], [1], [0, 0, 1, 1], [], []>} : vector<64x36xf32>, vector<36x4xf32>, vector<64x4xf32> -> vector<64x4xf32>
    %38 = arith.addf %3, %37 : vector<64x4xf32>
    %c0_21 = arith.constant 0 : index
    %c0_22 = arith.constant 0 : index
    %39 = arith.index_cast %2 : i32 to index
    %c0_23 = arith.constant 0 : index
    %c0_24 = arith.constant 0 : index
    %40 = vector.load %arg3[%c0_21, %c0_22, %39, %c0_23, %c0_24] : memref<1x1x10x10x4xf32, #tpu.memory_space<vmem>>, vector<1x1x10x10x4xf32>
    %41 = vector.shape_cast %40 : vector<1x1x10x10x4xf32> to vector<10x10x4xf32>
    %42 = vector.extract_strided_slice %41 {offsets = [0, 0, 0], sizes = [8, 8, 4], strides = [1, 1, 1]} : vector<10x10x4xf32> to vector<8x8x4xf32>
    %43 = vector.shape_cast %42 : vector<8x8x4xf32> to vector<64x4xf32>
    %c0_25 = arith.constant 0 : index
    %c0_26 = arith.constant 0 : index
    %44 = vector.load %arg8[%c0_25, %c0_26] : memref<64x36xf32, #tpu.memory_space<vmem>>, vector<64x4xf32>
    tpu.vector_store %arg8[%c0_25, %c0_26], %43 {strides = array<i32>} : memref<64x36xf32, #tpu.memory_space<vmem>>, vector<64x4xf32>,
    %45 = vector.extract_strided_slice %41 {offsets = [0, 1, 0], sizes = [8, 8, 4], strides = [1, 1, 1]} : vector<10x10x4xf32> to vector<8x8x4xf32>
    %46 = vector.shape_cast %45 : vector<8x8x4xf32> to vector<64x4xf32>
    %c0_27 = arith.constant 0 : index
    %c4_28 = arith.constant 4 : index
    %47 = vector.load %arg8[%c0_27, %c4_28] : memref<64x36xf32, #tpu.memory_space<vmem>>, vector<64x4xf32>
    tpu.vector_store %arg8[%c0_27, %c4_28], %46 {strides = array<i32>} : memref<64x36xf32, #tpu.memory_space<vmem>>, vector<64x4xf32>,
    %48 = vector.extract_strided_slice %41 {offsets = [0, 2, 0], sizes = [8, 8, 4], strides = [1, 1, 1]} : vector<10x10x4xf32> to vector<8x8x4xf32>
    %49 = vector.shape_cast %48 : vector<8x8x4xf32> to vector<64x4xf32>
    %c0_29 = arith.constant 0 : index
    %c8_30 = arith.constant 8 : index
    %50 = vector.load %arg8[%c0_29, %c8_30] : memref<64x36xf32, #tpu.memory_space<vmem>>, vector<64x4xf32>
    tpu.vector_store %arg8[%c0_29, %c8_30], %49 {strides = array<i32>} : memref<64x36xf32, #tpu.memory_space<vmem>>, vector<64x4xf32>,
    %51 = vector.extract_strided_slice %41 {offsets = [1, 0, 0], sizes = [8, 8, 4], strides = [1, 1, 1]} : vector<10x10x4xf32> to vector<8x8x4xf32>
    %52 = vector.shape_cast %51 : vector<8x8x4xf32> to vector<64x4xf32>
    %c0_31 = arith.constant 0 : index
    %c12_32 = arith.constant 12 : index
    %53 = vector.load %arg8[%c0_31, %c12_32] : memref<64x36xf32, #tpu.memory_space<vmem>>, vector<64x4xf32>
    tpu.vector_store %arg8[%c0_31, %c12_32], %52 {strides = array<i32>} : memref<64x36xf32, #tpu.memory_space<vmem>>, vector<64x4xf32>,
    %54 = vector.extract_strided_slice %41 {offsets = [1, 1, 0], sizes = [8, 8, 4], strides = [1, 1, 1]} : vector<10x10x4xf32> to vector<8x8x4xf32>
    %55 = vector.shape_cast %54 : vector<8x8x4xf32> to vector<64x4xf32>
    %c0_33 = arith.constant 0 : index
    %c16_34 = arith.constant 16 : index
    %56 = vector.load %arg8[%c0_33, %c16_34] : memref<64x36xf32, #tpu.memory_space<vmem>>, vector<64x4xf32>
    tpu.vector_store %arg8[%c0_33, %c16_34], %55 {strides = array<i32>} : memref<64x36xf32, #tpu.memory_space<vmem>>, vector<64x4xf32>,
    %57 = vector.extract_strided_slice %41 {offsets = [1, 2, 0], sizes = [8, 8, 4], strides = [1, 1, 1]} : vector<10x10x4xf32> to vector<8x8x4xf32>
    %58 = vector.shape_cast %57 : vector<8x8x4xf32> to vector<64x4xf32>
    %c0_35 = arith.constant 0 : index
    %c20_36 = arith.constant 20 : index
    %59 = vector.load %arg8[%c0_35, %c20_36] : memref<64x36xf32, #tpu.memory_space<vmem>>, vector<64x4xf32>
    tpu.vector_store %arg8[%c0_35, %c20_36], %58 {strides = array<i32>} : memref<64x36xf32, #tpu.memory_space<vmem>>, vector<64x4xf32>,
    %60 = vector.extract_strided_slice %41 {offsets = [2, 0, 0], sizes = [8, 8, 4], strides = [1, 1, 1]} : vector<10x10x4xf32> to vector<8x8x4xf32>
    %61 = vector.shape_cast %60 : vector<8x8x4xf32> to vector<64x4xf32>
    %c0_37 = arith.constant 0 : index
    %c24_38 = arith.constant 24 : index
    %62 = vector.load %arg8[%c0_37, %c24_38] : memref<64x36xf32, #tpu.memory_space<vmem>>, vector<64x4xf32>
    tpu.vector_store %arg8[%c0_37, %c24_38], %61 {strides = array<i32>} : memref<64x36xf32, #tpu.memory_space<vmem>>, vector<64x4xf32>,
    %63 = vector.extract_strided_slice %41 {offsets = [2, 1, 0], sizes = [8, 8, 4], strides = [1, 1, 1]} : vector<10x10x4xf32> to vector<8x8x4xf32>
    %64 = vector.shape_cast %63 : vector<8x8x4xf32> to vector<64x4xf32>
    %c0_39 = arith.constant 0 : index
    %c28_40 = arith.constant 28 : index
    %65 = vector.load %arg8[%c0_39, %c28_40] : memref<64x36xf32, #tpu.memory_space<vmem>>, vector<64x4xf32>
    tpu.vector_store %arg8[%c0_39, %c28_40], %64 {strides = array<i32>} : memref<64x36xf32, #tpu.memory_space<vmem>>, vector<64x4xf32>,
    %66 = vector.extract_strided_slice %41 {offsets = [2, 2, 0], sizes = [8, 8, 4], strides = [1, 1, 1]} : vector<10x10x4xf32> to vector<8x8x4xf32>
    %67 = vector.shape_cast %66 : vector<8x8x4xf32> to vector<64x4xf32>
    %c0_41 = arith.constant 0 : index
    %c32_42 = arith.constant 32 : index
    %68 = vector.load %arg8[%c0_41, %c32_42] : memref<64x36xf32, #tpu.memory_space<vmem>>, vector<64x4xf32>
    tpu.vector_store %arg8[%c0_41, %c32_42], %67 {strides = array<i32>} : memref<64x36xf32, #tpu.memory_space<vmem>>, vector<64x4xf32>,
    %c0_43 = arith.constant 0 : index
    %c0_44 = arith.constant 0 : index
    %69 = vector.load %arg8[%c0_43, %c0_44] : memref<64x36xf32, #tpu.memory_space<vmem>>, vector<64x36xf32>
    %c1 = arith.constant 1 : index
    %c0_45 = arith.constant 0 : index
    %c0_46 = arith.constant 0 : index
    %70 = vector.load %arg5[%c1, %c0_45, %c0_46] : memref<3x36x4xf32, #tpu.memory_space<vmem>>, vector<1x36x4xf32>
    %71 = vector.shape_cast %70 : vector<1x36x4xf32> to vector<36x4xf32>
    %cst_47 = arith.constant dense<0.000000e+00> : vector<64x4xf32>
    %72 = tpu.matmul %69, %71, %cst_47 {dimension_numbers = #tpu.dot_dimension_numbers<[1], [0], [0], [1], [0, 0, 1, 1], [], []>} : vector<64x36xf32>, vector<36x4xf32>, vector<64x4xf32> -> vector<64x4xf32>
    %73 = arith.addf %38, %72 : vector<64x4xf32>
    %c0_48 = arith.constant 0 : index
    %c0_49 = arith.constant 0 : index
    %74 = arith.index_cast %2 : i32 to index
    %c0_50 = arith.constant 0 : index
    %c0_51 = arith.constant 0 : index
    %75 = vector.load %arg4[%c0_48, %c0_49, %74, %c0_50, %c0_51] : memref<1x1x10x10x4xf32, #tpu.memory_space<vmem>>, vector<1x1x10x10x4xf32>
    %76 = vector.shape_cast %75 : vector<1x1x10x10x4xf32> to vector<10x10x4xf32>
    %77 = vector.extract_strided_slice %76 {offsets = [0, 0, 0], sizes = [8, 8, 4], strides = [1, 1, 1]} : vector<10x10x4xf32> to vector<8x8x4xf32>
    %78 = vector.shape_cast %77 : vector<8x8x4xf32> to vector<64x4xf32>
    %c0_52 = arith.constant 0 : index
    %c0_53 = arith.constant 0 : index
    %79 = vector.load %arg8[%c0_52, %c0_53] : memref<64x36xf32, #tpu.memory_space<vmem>>, vector<64x4xf32>
    tpu.vector_store %arg8[%c0_52, %c0_53], %78 {strides = array<i32>} : memref<64x36xf32, #tpu.memory_space<vmem>>, vector<64x4xf32>,
    %80 = vector.extract_strided_slice %76 {offsets = [0, 1, 0], sizes = [8, 8, 4], strides = [1, 1, 1]} : vector<10x10x4xf32> to vector<8x8x4xf32>
    %81 = vector.shape_cast %80 : vector<8x8x4xf32> to vector<64x4xf32>
    %c0_54 = arith.constant 0 : index
    %c4_55 = arith.constant 4 : index
    %82 = vector.load %arg8[%c0_54, %c4_55] : memref<64x36xf32, #tpu.memory_space<vmem>>, vector<64x4xf32>
    tpu.vector_store %arg8[%c0_54, %c4_55], %81 {strides = array<i32>} : memref<64x36xf32, #tpu.memory_space<vmem>>, vector<64x4xf32>,
    %83 = vector.extract_strided_slice %76 {offsets = [0, 2, 0], sizes = [8, 8, 4], strides = [1, 1, 1]} : vector<10x10x4xf32> to vector<8x8x4xf32>
    %84 = vector.shape_cast %83 : vector<8x8x4xf32> to vector<64x4xf32>
    %c0_56 = arith.constant 0 : index
    %c8_57 = arith.constant 8 : index
    %85 = vector.load %arg8[%c0_56, %c8_57] : memref<64x36xf32, #tpu.memory_space<vmem>>, vector<64x4xf32>
    tpu.vector_store %arg8[%c0_56, %c8_57], %84 {strides = array<i32>} : memref<64x36xf32, #tpu.memory_space<vmem>>, vector<64x4xf32>,
    %86 = vector.extract_strided_slice %76 {offsets = [1, 0, 0], sizes = [8, 8, 4], strides = [1, 1, 1]} : vector<10x10x4xf32> to vector<8x8x4xf32>
    %87 = vector.shape_cast %86 : vector<8x8x4xf32> to vector<64x4xf32>
    %c0_58 = arith.constant 0 : index
    %c12_59 = arith.constant 12 : index
    %88 = vector.load %arg8[%c0_58, %c12_59] : memref<64x36xf32, #tpu.memory_space<vmem>>, vector<64x4xf32>
    tpu.vector_store %arg8[%c0_58, %c12_59], %87 {strides = array<i32>} : memref<64x36xf32, #tpu.memory_space<vmem>>, vector<64x4xf32>,
    %89 = vector.extract_strided_slice %76 {offsets = [1, 1, 0], sizes = [8, 8, 4], strides = [1, 1, 1]} : vector<10x10x4xf32> to vector<8x8x4xf32>
    %90 = vector.shape_cast %89 : vector<8x8x4xf32> to vector<64x4xf32>
    %c0_60 = arith.constant 0 : index
    %c16_61 = arith.constant 16 : index
    %91 = vector.load %arg8[%c0_60, %c16_61] : memref<64x36xf32, #tpu.memory_space<vmem>>, vector<64x4xf32>
    tpu.vector_store %arg8[%c0_60, %c16_61], %90 {strides = array<i32>} : memref<64x36xf32, #tpu.memory_space<vmem>>, vector<64x4xf32>,
    %92 = vector.extract_strided_slice %76 {offsets = [1, 2, 0], sizes = [8, 8, 4], strides = [1, 1, 1]} : vector<10x10x4xf32> to vector<8x8x4xf32>
    %93 = vector.shape_cast %92 : vector<8x8x4xf32> to vector<64x4xf32>
    %c0_62 = arith.constant 0 : index
    %c20_63 = arith.constant 20 : index
    %94 = vector.load %arg8[%c0_62, %c20_63] : memref<64x36xf32, #tpu.memory_space<vmem>>, vector<64x4xf32>
    tpu.vector_store %arg8[%c0_62, %c20_63], %93 {strides = array<i32>} : memref<64x36xf32, #tpu.memory_space<vmem>>, vector<64x4xf32>,
    %95 = vector.extract_strided_slice %76 {offsets = [2, 0, 0], sizes = [8, 8, 4], strides = [1, 1, 1]} : vector<10x10x4xf32> to vector<8x8x4xf32>
    %96 = vector.shape_cast %95 : vector<8x8x4xf32> to vector<64x4xf32>
    %c0_64 = arith.constant 0 : index
    %c24_65 = arith.constant 24 : index
    %97 = vector.load %arg8[%c0_64, %c24_65] : memref<64x36xf32, #tpu.memory_space<vmem>>, vector<64x4xf32>
    tpu.vector_store %arg8[%c0_64, %c24_65], %96 {strides = array<i32>} : memref<64x36xf32, #tpu.memory_space<vmem>>, vector<64x4xf32>,
    %98 = vector.extract_strided_slice %76 {offsets = [2, 1, 0], sizes = [8, 8, 4], strides = [1, 1, 1]} : vector<10x10x4xf32> to vector<8x8x4xf32>
    %99 = vector.shape_cast %98 : vector<8x8x4xf32> to vector<64x4xf32>
    %c0_66 = arith.constant 0 : index
    %c28_67 = arith.constant 28 : index
    %100 = vector.load %arg8[%c0_66, %c28_67] : memref<64x36xf32, #tpu.memory_space<vmem>>, vector<64x4xf32>
    tpu.vector_store %arg8[%c0_66, %c28_67], %99 {strides = array<i32>} : memref<64x36xf32, #tpu.memory_space<vmem>>, vector<64x4xf32>,
    %101 = vector.extract_strided_slice %76 {offsets = [2, 2, 0], sizes = [8, 8, 4], strides = [1, 1, 1]} : vector<10x10x4xf32> to vector<8x8x4xf32>
    %102 = vector.shape_cast %101 : vector<8x8x4xf32> to vector<64x4xf32>
    %c0_68 = arith.constant 0 : index
    %c32_69 = arith.constant 32 : index
    %103 = vector.load %arg8[%c0_68, %c32_69] : memref<64x36xf32, #tpu.memory_space<vmem>>, vector<64x4xf32>
    tpu.vector_store %arg8[%c0_68, %c32_69], %102 {strides = array<i32>} : memref<64x36xf32, #tpu.memory_space<vmem>>, vector<64x4xf32>,
    %c0_70 = arith.constant 0 : index
    %c0_71 = arith.constant 0 : index
    %104 = vector.load %arg8[%c0_70, %c0_71] : memref<64x36xf32, #tpu.memory_space<vmem>>, vector<64x36xf32>
    %c2 = arith.constant 2 : index
    %c0_72 = arith.constant 0 : index
    %c0_73 = arith.constant 0 : index
    %105 = vector.load %arg5[%c2, %c0_72, %c0_73] : memref<3x36x4xf32, #tpu.memory_space<vmem>>, vector<1x36x4xf32>
    %106 = vector.shape_cast %105 : vector<1x36x4xf32> to vector<36x4xf32>
    %cst_74 = arith.constant dense<0.000000e+00> : vector<64x4xf32>
    %107 = tpu.matmul %104, %106, %cst_74 {dimension_numbers = #tpu.dot_dimension_numbers<[1], [0], [0], [1], [0, 0, 1, 1], [], []>} : vector<64x36xf32>, vector<36x4xf32>, vector<64x4xf32> -> vector<64x4xf32>
    %108 = arith.addf %73, %107 : vector<64x4xf32>
    %109 = vector.broadcast %0 : vector<1x4xf32> to vector<64x4xf32>
    %110 = arith.addf %108, %109 : vector<64x4xf32>
    %cst_75 = arith.constant 0.000000e+00 : f32
    %111 = vector.broadcast %cst_75 : f32 to vector<64x4xf32>
    %112 = arith.maximumf %110, %111 : vector<64x4xf32>
    %113 = vector.shape_cast %112 : vector<64x4xf32> to vector<8x8x4xf32>
    %c0_76 = arith.constant 0 : index
    %c0_77 = arith.constant 0 : index
    %114 = arith.index_cast %2 : i32 to index
    %c0_78 = arith.constant 0 : index
    %c0_79 = arith.constant 0 : index
    %115 = vector.load %arg7[%c0_76, %c0_77, %114, %c0_78, %c0_79] : memref<1x1x8x8x4xf32, #tpu.memory_space<vmem>>, vector<1x1x8x8x4xf32>
    %116 = vector.shape_cast %115 : vector<1x1x8x8x4xf32> to vector<8x8x4xf32>
    %117 = vector.shape_cast %113 : vector<8x8x4xf32> to vector<1x1x8x8x4xf32>
    tpu.vector_store %arg7[%c0_76, %c0_77, %114, %c0_78, %c0_79], %117 {strides = array<i32>} : memref<1x1x8x8x4xf32, #tpu.memory_space<vmem>>, vector<1x1x8x8x4xf32>,
    %c1_i32 = arith.constant 1 : i32
    return
  }
  func.func @transform_0(%arg0: i32, %arg1: i32) -> (i32, i32, i32, i32, i32) {
    %c0_i32 = arith.constant 0 : i32
    %0 = arith.addi %arg1, %c0_i32 : i32
    %c0_i32_0 = arith.constant 0 : i32
    %c0_i32_1 = arith.constant 0 : i32
    %c0_i32_2 = arith.constant 0 : i32
    %c0_i32_3 = arith.constant 0 : i32
    return %arg0, %0, %c0_i32_0, %c0_i32_1, %c0_i32_2 : i32, i32, i32, i32, i32
  }
  func.func @transform_1(%arg0: i32, %arg1: i32) -> (i32, i32, i32, i32, i32) {
    %c1_i32 = arith.constant 1 : i32
    %0 = arith.addi %arg1, %c1_i32 : i32
    %c0_i32 = arith.constant 0 : i32
    %c0_i32_0 = arith.constant 0 : i32
    %c0_i32_1 = arith.constant 0 : i32
    %c0_i32_2 = arith.constant 0 : i32
    return %arg0, %0, %c0_i32, %c0_i32_0, %c0_i32_1 : i32, i32, i32, i32, i32
  }
  func.func @transform_2(%arg0: i32, %arg1: i32) -> (i32, i32, i32, i32, i32) {
    %c2_i32 = arith.constant 2 : i32
    %0 = arith.addi %arg1, %c2_i32 : i32
    %c0_i32 = arith.constant 0 : i32
    %c0_i32_0 = arith.constant 0 : i32
    %c0_i32_1 = arith.constant 0 : i32
    %c0_i32_2 = arith.constant 0 : i32
    return %arg0, %0, %c0_i32, %c0_i32_0, %c0_i32_1 : i32, i32, i32, i32, i32
  }
  func.func @transform_3(%arg0: i32, %arg1: i32) -> (i32, i32, i32) {
    %c0_i32 = arith.constant 0 : i32
    %c0_i32_0 = arith.constant 0 : i32
    %c0_i32_1 = arith.constant 0 : i32
    %c0_i32_2 = arith.constant 0 : i32
    return %c0_i32, %c0_i32_0, %c0_i32_1 : i32, i32, i32
  }
  func.func @transform_4(%arg0: i32, %arg1: i32) -> (i32, i32) {
    %c0_i32 = arith.constant 0 : i32
    %c0_i32_0 = arith.constant 0 : i32
    %c0_i32_1 = arith.constant 0 : i32
    return %c0_i32, %c0_i32_0 : i32, i32
  }
  func.func @transform_5(%arg0: i32, %arg1: i32) -> (i32, i32, i32, i32, i32) {
    %c0_i32 = arith.constant 0 : i32
    %c0_i32_0 = arith.constant 0 : i32
    %c0_i32_1 = arith.constant 0 : i32
    %c0_i32_2 = arith.constant 0 : i32
    return %arg0, %arg1, %c0_i32, %c0_i32_0, %c0_i32_1 : i32, i32, i32, i32, i32
  }
}

</mosaic_0001>

<bundles_post_ra>
// kernel: tpu_custom_call.1
= control target key start
LH: loop header
LB: loop body
LE: loop exit
PB: predicated region body
PF: predicated region fallthrough
CT: control target
= control target key end

     0   :  { %s2068_s18 = smov 0   ;;  %s2070_s19 = smov 0   ;;  %s3241_s0 = inlined_call_operand.vmem [shape: f32[2,10,10,10,4], index: 0, kind: input, shape index: {}]   ;;  %s3242_s1 = inlined_call_operand.vmem [shape: f32[2,10,10,10,4], index: 1, kind: input, shape index: {}]   ;;  %s3243_s2 = inlined_call_operand.vmem [shape: f32[2,10,10,10,4], index: 2, kind: input, shape index: {}]   ;;  %s3244_s3 = inlined_call_operand.vmem [shape: f32[3,36,4], index: 3, kind: input, shape index: {}]   ;;  %s3245_s4 = inlined_call_operand.vmem [shape: f32[1,4], index: 4, kind: input, shape index: {}]   ;;  %s3246_s5 = inlined_call_operand.vmem [shape: f32[2,8,8,8,4], index: 5, kind: output, shape index: {}]  }
   0x1   :  { %s2072_s20 = smov 0   ;;  %s2074_s21 = smov 0  }
   0x2   :  { %s2076_s22 = smov 0  }
   0x3 LB: > { %s24_s23 = sadd.s32 1, %s2020_s20  ;;  %s27_s24 = sadd.s32 1, %s2024_s21  ;;  %s2028_s22 = sphi %s2076_s22, %s15_s22   ;;  %s2024_s21 = sphi %s2074_s21, %s3250_s21   ;;  %s2020_s20 = sphi %s2072_s20, %s3249_s20   ;;  %s2016_s19 = sphi %s2070_s19, %s3248_s19   ;;  %s2012_s18 = sphi %s2068_s18, %s3247_s18  }
   0x4   : > { %p25_p0 = scmp.ge.s32.totalorder %s24_s23, 8  ;;  %p1876_p1 = scmp.ge.s32.totalorder %s2028_s22, 1 }
   0x5   : > { %p247_p2 = scmp.lt.s32.totalorder %s2028_s22, 17 }
   0x6   : > { %s3252_s23 = smov (%p25_p0, %s24_s23), 0  ;;  %s3254_s24 = smov (!%p25_p0, %s27_s24), %s2024_s21 }
   0x7   : > { %p248_p3 = pnand %p1876_p1, %p247_p2  ;;  %p29_p4 = scmp.ge.s32.totalorder %s3254_s24, 2 }
   0x8   : > { %p303_p5 = scmp.lt.s32.totalorder (!%p248_p3), %s2016_s19, 1  ;;  %p305_p6 = scmp.lt.s32.totalorder (!%p248_p3), %s2012_s18, 9 }
   0x9   : > { %s3256_s24 = smov (%p29_p4, %s3254_s24), 0  ;;  %251 = sbr.rel (%p248_p3) target bundleno = 795 (0x31b), region = 40 }
   0xa   : > { %s2030_s8 = smov (!%p248_p3), 4   ;;  %s2031_s9 = smov (!%p248_p3), 8  }
   0xb   : > { %s2032_s10 = smov (!%p248_p3), 12   ;;  %s2033_s11 = smov (!%p248_p3), 16  }
   0xc   : > { %s2034_s12 = smov (!%p248_p3), 20   ;;  %s2035_s13 = smov (!%p248_p3), 24  }
   0xd   : > { %s2036_s14 = smov (!%p248_p3), 28   ;;  %s312_s15 = sadd.s32 (!%p248_p3), 1, %s2012_s18 }
   0xe   : > { %s3258_s19 = smov (!%p303_p5, %s2016_s19), 1  ;;  %vm391_vm0 = vcmask 1046528   ;;  %vm449_vm1 = vcmask 1045504   ;;  %vm366_vm2 = vcmask 31744   ;;  %vm440_vm3 = vcmask 64544   ;;  %p315_p7 = scmp.lt.s32.totalorder %s312_s15, 9 }
   0xf   : > { %s306_s25 = scalar_select %p305_p6, %s2012_s18, 9  ;;  %vm498_vm4 = vcmask 97344   ;;  %vm532_vm5 = vcmask 130144   ;;  %vm569_vm6 = vcmask 162944   ;;  %vm605_vm7 = vcmask 195744  }
  0x10   : > { %s2105_s26 = smul.u32 200, %s3258_s19  ;;  %s3260_s15 = smov (!%p315_p7, %s312_s15), 9  ;;  %vm639_vm8 = vcmask 228544   ;;  %vm1138_vm9 = vcmask 1043456   ;;  %vm676_vm10 = vcmask 261344   ;;  %vm712_vm11 = vcmask 294144  }
  0x11   : > { %s1937_s27 = smul.u32 20, %s306_s25  ;;  %s2037_s16 = smov 32   ;;  %vm1113_vm12 = vcmask 293888  }
  0x12   : > { %s1939_s17 = smul.u32 20, %s3260_s15  ;;  %s323_s15 = sadd.s32 2, %s2012_s18 }
  0x13   : > { %s309_s28 = sadd.s32 %s2105_s26, %s1937_s27  ;;  %p326_p8 = scmp.lt.s32.totalorder %s323_s15, 9 }
  0x14   : > { %s1877_s29 = sshll.u32 %s309_s28, 3  ;;  %s319_s25 = sadd.s32 %s1939_s17, %s2105_s26 }
  0x15   : > { %s2111_s7 = scalar_lea.vmem %s3241_s0, %s1877_s29  ;;  %s1878_s27 = sshll.u32 %s319_s25, 3 }
  0x16   : > { %v2114_v0 = vld [vmem:[%s2111_s7 + $0x40] sm:$0xff]  ;;  %v2117_v1 = vld [vmem:[%s2111_s7 + $0x48] sm:$0x3]  ;;  %v2132_v11 = vld [vmem:[%s2111_s7 + $0x50] sm:$0xff]  ;;  %s2375_s30 = scalar_lea.vmem %s3242_s1, %s1878_s27  ;;  %s3262_s15 = smov (!%p326_p8, %s323_s15), 9 }
  0x17   : > { %v2120_v2 = vld [vmem:[%s2111_s7 + $0x20] sm:$0xff]  ;;  %v404_v3 = vrot.slane %v2114_v0, 1  ;;  %v405_v4 = vrot.slane %v2117_v1, 1  ;;  %v351_v5 = vld [vmem:[%s2111_s7 + $0x28] sm:$0x3]  ;;  %v2139_v15 = vld [vmem:[%s2111_s7 + $0x30] sm:$0xff] }
  0x18   : > { %v398_v6 = vrot.slane %v2120_v2, 1  ;;  %v2127_v7 = vld [vmem:[%s2111_s7] sm:$0xff]  ;;  %v399_v8 = vrot.slane %v351_v5, 1  ;;  %v347_v9 = vld [vmem:[%s2111_s7 + $0x8] sm:$0x3]  ;;  %v2148_v18 = vld [vmem:[%s2111_s7 + $0x10] sm:$0xff] }
  0x19   : > { %v392_v10 = vrot.slane %v2127_v7, 1  ;;  %v2135_v12 = vsel %vm391_vm0, %v404_v3, %v405_v4  ;;  %v393_v13 = vrot.slane %v347_v9, 1  ;;  %v357_v14 = vld [vmem:[%s2111_s7 + $0x58] sm:$0x3]  ;;  %v407_v21 = vrot.slane %v2132_v11, 1  ;;  %v2168_v30 = vld [vmem:[%s2111_s7 + $0x70] sm:$0xff] }
  0x1a   : > { %v353_v16 = vld [vmem:[%s2111_s7 + $0x38] sm:$0x3]  ;;  %424 = vrot.lane.b32.xlu2 %v2135_v12, %s2030_s8  ;;  %v2145_v17 = vsel %vm391_vm0, %v398_v6, %v399_v8  ;;  %v408_v22 = vrot.slane %v357_v14, 1  ;;  %v401_v23 = vrot.slane %v2139_v15, 1  ;;  %v395_v25 = vrot.slane %v2148_v18, 1  ;;  %v2174_v32 = vld [vmem:[%s2111_s7 + $0x60] sm:$0xff] }
  0x1b   : > { %v349_v19 = vld [vmem:[%s2111_s7 + $0x18] sm:$0x3]  ;;  %420 = vrot.lane.b32.xlu1 %v2145_v17, %s2030_s8  ;;  %v394_v20 = vsel %vm391_vm0, %v392_v10, %v393_v13  ;;  %v402_v24 = vrot.slane %v353_v16, 1  ;;  %v359_v33 = vld [vmem:[%s2111_s7 + $0x68] sm:$0x3]  ;;  %v450_v34 = vrot.slane %v2127_v7, 2 }
  0x1c   : > { %416 = vrot.lane.b32.xlu0 %v394_v20, %s2030_s8  ;;  %v396_v26 = vrot.slane %v349_v19, 1  ;;  %v2159_v27 = vsel %vm391_vm0, %v407_v21, %v408_v22  ;;  %v361_v31 = vld [vmem:[%s2111_s7 + $0x78] sm:$0x3]  ;;  %v451_v35 = vrot.slane %v347_v9, 2  ;;  %v413_v36 = vrot.slane %v2168_v30, 1  ;;  %371 = vst.msk [vmem:[#allocation2 + $0x20] sm:$0xff] %vm366_vm2, %v2114_v0 }
  0x1d   : > { %v2162_v28 = vsel %vm391_vm0, %v401_v23, %v402_v24  ;;  %v414_v37 = vrot.slane %v361_v31, 1  ;;  %v410_v38 = vrot.slane %v2174_v32, 1  ;;  %v411_v39 = vrot.slane %v359_v33, 1  ;;  %367 = vst.msk [vmem:[#allocation2] sm:$0xff] %vm366_vm2, %v2127_v7  ;;  %v363_v3 = vld [vmem:[%s2111_s7 + $0x88] sm:$0x3] }
  0x1e   : > { %v2165_v29 = vsel %vm391_vm0, %v395_v25, %v396_v26  ;;  %v452_v40 = vsel %vm449_vm1, %v450_v34, %v451_v35  ;;  %v459_v43 = vrot.slane %v2139_v15, 2  ;;  %v460_v44 = vrot.slane %v353_v16, 2  ;;  %368 = vst.msk [vmem:[#allocation2 + $0x8] sm:$0xff] %vm366_vm2, %v2148_v18  ;;  %v2343_v23 = vld [vmem:[%s2111_s7 + $0x98] sm:$0x3]  ;;  %v2381_v34 = vld [vmem:[%s2375_s30 + $0x10] sm:$0xff] }
  0x1f   : > { %v2186_v41 = vsel %vm391_vm0, %v413_v36, %v414_v37  ;;  %v2189_v42 = vsel %vm391_vm0, %v410_v38, %v411_v39  ;;  %v456_v45 = vrot.slane %v2120_v2, 2  ;;  %v457_v46 = vrot.slane %v351_v5, 2  ;;  %369 = vst.msk [vmem:[#allocation2 + $0x10] sm:$0xff] %vm366_vm2, %v2120_v2  ;;  %v2384_v35 = vld [vmem:[%s2375_s30 + $0x18] sm:$0x3]  ;;  %v2387_v36 = vld [vmem:[%s2375_s30] sm:$0xff] }
  0x20   : > { %v453_v47 = vrot.slane %v2148_v18, 2  ;;  %v454_v48 = vrot.slane %v349_v19, 2  ;;  %v2200_v49 = vsel %vm449_vm1, %v459_v43, %v460_v44  ;;  %v468_v52 = vrot.slane %v2174_v32, 2  ;;  %370 = vst.msk [vmem:[#allocation2 + $0x18] sm:$0xff] %vm366_vm2, %v2139_v15  ;;  %v2390_v37 = vld [vmem:[%s2375_s30 + $0x8] sm:$0x3] }
  0x21   : > { %v2203_v50 = vsel %vm449_vm1, %v456_v45, %v457_v46  ;;  %v469_v53 = vrot.slane %v359_v33, 2  ;;  %v465_v54 = vrot.slane %v2132_v11, 2  ;;  %v466_v55 = vrot.slane %v357_v14, 2  ;;  %372 = vst.msk [vmem:[#allocation2 + $0x28] sm:$0xff] %vm366_vm2, %v2132_v11  ;;  %s1940_s17 = smul.u32 20, %s3262_s15  ;;  %p336_p9 = scmp.lt.s32.totalorder %s2012_s18, 7 }
  0x22   : > { %426 = vrot.lane.b32.xlu2 %v2159_v27, %s2030_s8  ;;  %v455_v51 = vsel %vm449_vm1, %v453_v47, %v454_v48  ;;  %v462_v56 = vrot.slane %v2114_v0, 2  ;;  %v463_v57 = vrot.slane %v2117_v1, 2  ;;  %v471_v61 = vrot.slane %v2168_v30, 2  ;;  %v362_v1 = vld [vmem:[%s2111_s7 + $0x80] sm:$0xff]  ;;  %373 = vst.msk [vmem:[#allocation2 + $0x30] sm:$0xff] %vm366_vm2, %v2174_v32 }
  0x23   : > { %422 = vrot.lane.b32.xlu1 %v2162_v28, %s2030_s8  ;;  %v2216_v58 = vsel %vm449_vm1, %v468_v52, %v469_v53  ;;  %v2219_v59 = vsel %vm449_vm1, %v465_v54, %v466_v55  ;;  %v472_v62 = vrot.slane %v361_v31, 2  ;;  %374 = vst.msk [vmem:[#allocation2 + $0x38] sm:$0xff] %vm366_vm2, %v2168_v30  ;;  %v542_v4 = vrot.slane %v362_v1, 1  ;;  %v2419_v52 = vld [vmem:[%s2375_s30 + $0x30] sm:$0xff]  ;;  %v2422_v53 = vld [vmem:[%s2375_s30 + $0x38] sm:$0x3]  ;;  %s330_s25 = sadd.s32 %s1940_s17, %s2105_s26 }
  0x24   : > { %418 = vrot.lane.b32.xlu0 %v2165_v29, %s2030_s8  ;;  %v2222_v60 = vsel %vm449_vm1, %v462_v56, %v463_v57  ;;  %v543_v5 = vrot.slane %v363_v3, 1  ;;  %v578_v9 = vrot.slane %v362_v1, 2  ;;  %v579_v10 = vrot.slane %v363_v3, 2  ;;  %v2427_v54 = vld [vmem:[%s2375_s30 + $0x20] sm:$0xff]  ;;  %v740_v55 = vld [vmem:[%s2375_s30 + $0x28] sm:$0x3] }
  0x25   : > { %v2232_v63 = vsel %vm449_vm1, %v471_v61, %v472_v62  ;;  %v650_v24 = vrot.slane %v2343_v23, 1  ;;  %v782_v38 = vrot.slane %v2381_v34, 1  ;;  %v783_v39 = vrot.slane %v2384_v35, 1  ;;  %s1879_s27 = sshll.u32 %s330_s25, 3  ;;  %s3264_s18 = smov (!%p336_p9, %s2012_s18), 7 }
  0x26   : > { %v2282_v6 = vsel %vm391_vm0, %v542_v4, %v543_v5  ;;  %v2304_v13 = vsel %vm449_vm1, %v578_v9, %v579_v10  ;;  %v686_v45 = vrot.slane %v2343_v23, 2  ;;  %v785_v62 = vrot.slane %v2427_v54, 1  ;;  %v2447_v5 = vld [vmem:[%s2375_s30 + $0x70] sm:$0xff]  ;;  %v2459_v9 = vld [vmem:[%s2375_s30 + $0x68] sm:$0x3]  ;;  %s2712_s29 = scalar_lea.vmem %s3243_s2, %s1879_s27 }
  0x27   : > { %v2407_v47 = vsel %vm391_vm0, %v782_v38, %v783_v39  ;;  %v2464_v10 = vld [vmem:[%s2375_s30 + $0x50] sm:$0xff] }
  0x2a   : > { %474 = vrot.lane.b32.xlu2 %v452_v40, %s2031_s9 }
  0x2b   : > { %430 = vrot.lane.b32.xlu1 %v2186_v41, %s2030_s8 }
  0x2c   : > { %428 = vrot.lane.b32.xlu0 %v2189_v42, %s2030_s8 }
  0x32   : > { %480 = vrot.lane.b32.xlu2 %v2200_v49, %s2031_s9 }
  0x33   : > { %478 = vrot.lane.b32.xlu1 %v2203_v50, %s2031_s9 }
  0x34   : > { %476 = vrot.lane.b32.xlu0 %v455_v51, %s2031_s9 }
  0x3a   : > { %486 = vrot.lane.b32.xlu2 %v2216_v58, %s2031_s9 }
  0x3b   : > { %484 = vrot.lane.b32.xlu1 %v2219_v59, %s2031_s9 }
  0x3c   : > { %482 = vrot.lane.b32.xlu0 %v2222_v60, %s2031_s9 }
  0x42   : > { %510 = vrot.lane.b32.xlu2 %v2120_v2, %s2032_s10 }
  0x43   : > { %508 = vrot.lane.b32.xlu1 %v2148_v18, %s2032_s10 }
  0x44   : > { %488 = vrot.lane.b32.xlu0 %v2232_v63, %s2031_s9 }
  0x4a   : > { %516 = vrot.lane.b32.xlu2 %v2132_v11, %s2032_s10 }
  0x4b   : > { %514 = vrot.lane.b32.xlu1 %v2114_v0, %s2032_s10 }
  0x4c   : > { %512 = vrot.lane.b32.xlu0 %v2139_v15, %s2032_s10 }
  0x52   : > { %522 = vrot.lane.b32.xlu2 %v362_v1, %s2032_s10 }
  0x53   : > { %520 = vrot.lane.b32.xlu1 %v2168_v30, %s2032_s10 }
  0x54   : > { %518 = vrot.lane.b32.xlu0 %v2174_v32, %s2032_s10 }
  0x5a   : > { %549 = vrot.lane.b32.xlu2 %v2162_v28, %s2033_s11 }
  0x5b   : > { %547 = vrot.lane.b32.xlu1 %v2145_v17, %s2033_s11 }
  0x5c   : > { %545 = vrot.lane.b32.xlu0 %v2165_v29, %s2033_s11 }
  0x62   : > { %555 = vrot.lane.b32.xlu2 %v2189_v42, %s2033_s11 }
  0x63   : > { %553 = vrot.lane.b32.xlu1 %v2159_v27, %s2033_s11 }
  0x64   : > { %551 = vrot.lane.b32.xlu0 %v2135_v12, %s2033_s11 }
  0x6a   : > { %581 = vrot.lane.b32.xlu2 %v455_v51, %s2034_s12 }
  0x6b   : > { %559 = vrot.lane.b32.xlu1 %v2282_v6, %s2033_s11 }
  0x6c   : > { %557 = vrot.lane.b32.xlu0 %v2186_v41, %s2033_s11 }
  0x72   : > { %587 = vrot.lane.b32.xlu2 %v2222_v60, %s2034_s12 }
  0x73   : > { %585 = vrot.lane.b32.xlu1 %v2200_v49, %s2034_s12 }
  0x74   : > { %583 = vrot.lane.b32.xlu0 %v2203_v50, %s2034_s12  ;;  %v425_v7 = vpop.permute.xlu2 %424 }
  0x75   : > { %445 = vst.msk [vmem:[#allocation2 + $0x20] sm:$0xff] %vm440_vm3, %v425_v7 }
  0x7a   : > { %593 = vrot.lane.b32.xlu2 %v2232_v63, %s2034_s12 }
  0x7b   : > { %591 = vrot.lane.b32.xlu1 %v2216_v58, %s2034_s12 }
  0x7c   : > { %589 = vrot.lane.b32.xlu0 %v2219_v59, %s2034_s12  ;;  %v427_v8 = vpop.permute.xlu2 %426 }
  0x7d   : > { %446 = vst.msk [vmem:[#allocation2 + $0x28] sm:$0xff] %vm440_vm3, %v427_v8  ;;  %v2456_v8 = vld [vmem:[%s2375_s30 + $0x60] sm:$0xff] }
  0x82   : > { %617 = vrot.lane.b32.xlu2 %v2139_v15, %s2035_s13 }
  0x83   : > { %615 = vrot.lane.b32.xlu1 %v2120_v2, %s2035_s13  ;;  %v2321_v2 = vld [vmem:[%s2111_s7 + $0x90] sm:$0xff] }
  0x84   : > { %595 = vrot.lane.b32.xlu0 %v2304_v13, %s2034_s12  ;;  %v475_v14 = vpop.permute.xlu2 %474  ;;  %v685_v43 = vrot.slane %v2321_v2, 2 }
  0x86   : > { %v687_v51 = vsel %vm449_vm1, %v685_v43, %v686_v45  ;;  %v845_v43 = vrot.slane %v2422_v53, 2 }
  0x8a   : > { %623 = vrot.lane.b32.xlu2 %v2174_v32, %s2035_s13 }
  0x8b   : > { %621 = vrot.lane.b32.xlu1 %v2132_v11, %s2035_s13 }
  0x8c   : > { %619 = vrot.lane.b32.xlu0 %v2114_v0, %s2035_s13  ;;  %v481_v16 = vpop.permute.xlu2 %480 }
  0x8d   : > { %v421_v18 = vpop.permute.xlu1 %420 }
  0x8e   : > { %443 = vst.msk [vmem:[#allocation2 + $0x10] sm:$0xff] %vm440_vm3, %v421_v18  ;;  %v417_v15 = vpop.permute.xlu0 %416 }
  0x8f   : > { %441 = vst.msk [vmem:[#allocation2] sm:$0xff] %vm440_vm3, %v417_v15  ;;  %v797_v15 = vrot.slane %v2456_v8, 1 }
  0x90   : > { %499 = vst.msk [vmem:[#allocation2] sm:$0xff] %vm498_vm4, %v475_v14  ;;  %v800_v14 = vrot.slane %v2447_v5, 1 }
  0x92   : > { %629 = vrot.lane.b32.xlu2 %v2321_v2, %s2035_s13 }
  0x93   : > { %627 = vrot.lane.b32.xlu1 %v362_v1, %s2035_s13 }
  0x94   : > { %625 = vrot.lane.b32.xlu0 %v2168_v30, %s2035_s13  ;;  %v487_v0 = vpop.permute.xlu2 %486 }
  0x95   : > { %v423_v11 = vpop.permute.xlu1 %422 }
  0x96   : > { %444 = vst.msk [vmem:[#allocation2 + $0x18] sm:$0xff] %vm440_vm3, %v423_v11  ;;  %v419_v19 = vpop.permute.xlu0 %418  ;;  %v794_v11 = vrot.slane %v2464_v10, 1 }
  0x97   : > { %442 = vst.msk [vmem:[#allocation2 + $0x8] sm:$0xff] %vm440_vm3, %v419_v19 }
  0x98   : > { %502 = vst.msk [vmem:[#allocation2 + $0x18] sm:$0xff] %vm498_vm4, %v481_v16 }
  0x9a   : > { %656 = vrot.lane.b32.xlu2 %v2135_v12, %s2036_s14  ;;  %v649_v12 = vrot.slane %v2321_v2, 1  ;;  %v798_v2 = vrot.slane %v2459_v9, 1 }
  0x9b   : > { %654 = vrot.lane.b32.xlu1 %v2162_v28, %s2036_s14 }
  0x9c   : > { %652 = vrot.lane.b32.xlu0 %v2145_v17, %s2036_s14  ;;  %v511_v20 = vpop.permute.xlu2 %510  ;;  %v651_v28 = vsel %vm391_vm0, %v649_v12, %v650_v24  ;;  %v841_v12 = vrot.slane %v2427_v54, 2 }
  0x9d   : > { %v431_v21 = vpop.permute.xlu1 %430 }
  0x9e   : > { %448 = vst.msk [vmem:[#allocation2 + $0x38] sm:$0xff] %vm440_vm3, %v431_v21  ;;  %v429_v22 = vpop.permute.xlu0 %428 }
  0x9f   : > { %447 = vst.msk [vmem:[#allocation2 + $0x30] sm:$0xff] %vm440_vm3, %v429_v22  ;;  %v2482_v22 = vsel %vm391_vm0, %v797_v15, %v798_v2  ;;  %v2586_v15 = vld [vmem:[%s3244_s3 + $0x18] sm:$0xff]  ;;  %v2593_v2 = vld [vmem:[%s3244_s3 + $0x10] sm:$0xff] }
  0xa0   : > { %505 = vst.msk [vmem:[#allocation2 + $0x30] sm:$0xff] %vm498_vm4, %v487_v0 }
  0xa2   : > { %662 = vrot.lane.b32.xlu2 %v2186_v41, %s2036_s14  ;;  %v779_v41 = vrot.slane %v2387_v36, 1 }
  0xa3   : > { %660 = vrot.lane.b32.xlu1 %v2189_v42, %s2036_s14  ;;  %v780_v42 = vrot.slane %v2390_v37, 1 }
  0xa4   : > { %658 = vrot.lane.b32.xlu0 %v2159_v27, %s2036_s14  ;;  %v517_v17 = vpop.permute.xlu2 %516 }
  0xa5   : > { %v479_v25 = vpop.permute.xlu1 %478  ;;  %v781_v48 = vsel %vm391_vm0, %v779_v41, %v780_v42  ;;  %v844_v42 = vrot.slane %v2419_v52, 2 }
  0xa6   : > { %501 = vst.msk [vmem:[#allocation2 + $0x10] sm:$0xff] %vm498_vm4, %v479_v25  ;;  %v477_v26 = vpop.permute.xlu0 %476  ;;  %v838_v25 = vrot.slane %v2381_v34, 2 }
  0xa7   : > { %500 = vst.msk [vmem:[#allocation2 + $0x8] sm:$0xff] %vm498_vm4, %v477_v26  ;;  %v839_v26 = vrot.slane %v2384_v35, 2  ;;  %v850_v35 = vrot.slane %v2464_v10, 2 }
  0xa8   : > { %534 = vst.msk [vmem:[#allocation2 + $0x8] sm:$0xff] %vm532_vm5, %v511_v20 }
  0xaa   : > { %688 = vrot.lane.b32.xlu2 %v2203_v50, %s2037_s16  ;;  %v2414_v50 = vld [vmem:[%s2375_s30 + $0x48] sm:$0x3] }
  0xab   : > { %666 = vrot.lane.b32.xlu1 %v651_v28, %s2036_s14  ;;  %v792_v57 = vrot.slane %v2414_v50, 1 }
  0xac   : > { %664 = vrot.lane.b32.xlu0 %v2282_v6, %s2036_s14  ;;  %v523_v27 = vpop.permute.xlu2 %522  ;;  %v2450_v6 = vld [vmem:[%s2375_s30 + $0x78] sm:$0x3] }
  0xad   : > { %v485_v29 = vpop.permute.xlu1 %484  ;;  %v801_v16 = vrot.slane %v2450_v6, 1 }
  0xae   : > { %504 = vst.msk [vmem:[#allocation2 + $0x28] sm:$0xff] %vm498_vm4, %v485_v29  ;;  %v483_v30 = vpop.permute.xlu0 %482  ;;  %v836_v29 = vrot.slane %v2390_v37, 2 }
  0xaf   : > { %503 = vst.msk [vmem:[#allocation2 + $0x20] sm:$0xff] %vm498_vm4, %v483_v30  ;;  %v2479_v21 = vsel %vm391_vm0, %v800_v14, %v801_v16  ;;  %v2577_v14 = vld [vmem:[%s3244_s3 + $0x20] sm:$0xf] }
  0xb0   : > { %537 = vst.msk [vmem:[#allocation2 + $0x20] sm:$0xff] %vm532_vm5, %v517_v17  ;;  %v842_v17 = vrot.slane %v740_v55, 2  ;;  %1897 = vmatpush.msk.msra.mxu1 %vm1138_vm9, %v2577_v14 }
  0xb2   : > { %694 = vrot.lane.b32.xlu2 %v2219_v59, %s2037_s16  ;;  %v788_v59 = vrot.slane %v2419_v52, 1  ;;  %1222 = vmatpush.msra.mxu1 %v2586_v15 }
  0xb3   : > { %692 = vrot.lane.b32.xlu1 %v2222_v60, %s2037_s16  ;;  %v789_v60 = vrot.slane %v2422_v53, 1  ;;  %v857_v53 = vrot.slane %v2450_v6, 2 }
  0xb4   : > { %690 = vrot.lane.b32.xlu0 %v2200_v49, %s2037_s16  ;;  %v550_v31 = vpop.permute.xlu2 %549  ;;  %v2411_v49 = vld [vmem:[%s2375_s30 + $0x40] sm:$0xff]  ;;  %1223 = vmatpush.msra.mxu1 %v2593_v2 }
  0xb5   : > { %v509_v32 = vpop.permute.xlu1 %508  ;;  %v791_v56 = vrot.slane %v2411_v49, 1  ;;  %v2443_v4 = vsel %vm391_vm0, %v788_v59, %v789_v60  ;;  %v847_v39 = vrot.slane %v2411_v49, 2 }
  0xb6   : > { %533 = vst.msk [vmem:[#allocation2] sm:$0xff] %vm532_vm5, %v509_v32  ;;  %v489_v33 = vpop.permute.xlu0 %488  ;;  %v2505_v32 = vsel %vm449_vm1, %v838_v25, %v839_v26 }
  0xb7   : > { %506 = vst.msk [vmem:[#allocation2 + $0x38] sm:$0xff] %vm498_vm4, %v489_v33  ;;  %v2440_v3 = vsel %vm391_vm0, %v791_v56, %v792_v57  ;;  %v853_v56 = vrot.slane %v2456_v8, 2  ;;  %v854_v57 = vrot.slane %v2459_v9, 2 }
  0xb8   : > { %540 = vst.msk [vmem:[#allocation2 + $0x38] sm:$0xff] %vm532_vm5, %v523_v27  ;;  %v835_v27 = vrot.slane %v2387_v36, 2 }
  0xb9   : > { %v2548_v60 = vsel %vm449_vm1, %v853_v56, %v854_v57 }
  0xba   : > { %700 = vrot.lane.b32.xlu2 %v2304_v13, %s2037_s16  ;;  %v746_v13 = vld [vmem:[%s2375_s30 + $0x58] sm:$0x3]  ;;  %v837_v33 = vsel %vm449_vm1, %v835_v27, %v836_v29 }
  0xbb   : > { %698 = vrot.lane.b32.xlu1 %v2232_v63, %s2037_s16  ;;  %v786_v63 = vrot.slane %v740_v55, 1  ;;  %v795_v19 = vrot.slane %v746_v13, 1  ;;  %v851_v37 = vrot.slane %v746_v13, 2 }
  0xbc   : > { %696 = vrot.lane.b32.xlu0 %v2216_v58, %s2037_s16  ;;  %v556_v40 = vpop.permute.xlu2 %555 }
  0xbd   : > { %v515_v44 = vpop.permute.xlu1 %514  ;;  %v2453_v7 = vsel %vm391_vm0, %v785_v62, %v786_v63  ;;  %v2486_v23 = vsel %vm391_vm0, %v794_v11, %v795_v19  ;;  %v2522_v45 = vsel %vm449_vm1, %v850_v35, %v851_v37  ;;  %v2601_v11 = vld [vmem:[%s3244_s3 + $0x8] sm:$0xff] }
  0xbe   : > { %536 = vst.msk [vmem:[#allocation2 + $0x18] sm:$0xff] %vm532_vm5, %v515_v44  ;;  %v513_v46 = vpop.permute.xlu0 %512  ;;  %1224 = vmatpush.msra.mxu1 %v2601_v11 }
  0xbf   : > { %535 = vst.msk [vmem:[#allocation2 + $0x10] sm:$0xff] %vm532_vm5, %v513_v46 }
  0xc0   : > { %572 = vst.msk [vmem:[#allocation2 + $0x10] sm:$0xff] %vm569_vm6, %v550_v31  ;;  %v2502_v31 = vsel %vm449_vm1, %v841_v12, %v842_v17 }
  0xc2   : > { %805 = vrot.lane.b32.xlu2 %v2407_v47, %s2030_s8 }
  0xc3   : > { %803 = vrot.lane.b32.xlu1 %v781_v48, %s2030_s8  ;;  %v2529_v48 = vsel %vm449_vm1, %v844_v42, %v845_v43 }
  0xc4   : > { %702 = vrot.lane.b32.xlu0 %v687_v51, %s2037_s16  ;;  %v582_v58 = vpop.permute.xlu2 %581  ;;  %v856_v51 = vrot.slane %v2447_v5, 2 }
  0xc5   : > { %v521_v61 = vpop.permute.xlu1 %520 }
  0xc6   : > { %539 = vst.msk [vmem:[#allocation2 + $0x30] sm:$0xff] %vm532_vm5, %v521_v61  ;;  %v519_v1 = vpop.permute.xlu0 %518  ;;  %v2544_v59 = vsel %vm449_vm1, %v856_v51, %v857_v53 }
  0xc7   : > { %538 = vst.msk [vmem:[#allocation2 + $0x28] sm:$0xff] %vm532_vm5, %v519_v1 }
  0xc8   : > { %575 = vst.msk [vmem:[#allocation2 + $0x28] sm:$0xff] %vm569_vm6, %v556_v40  ;;  %v848_v40 = vrot.slane %v2414_v50, 2 }
  0xca   : > { %811 = vrot.lane.b32.xlu2 %v2440_v3, %s2030_s8  ;;  %v2525_v46 = vsel %vm449_vm1, %v847_v39, %v848_v40 }
  0xcb   : > { %809 = vrot.lane.b32.xlu1 %v2443_v4, %s2030_s8 }
  0xcc   : > { %807 = vrot.lane.b32.xlu0 %v2453_v7, %s2030_s8  ;;  %v588_v18 = vpop.permute.xlu2 %587 }
  0xcd   : > { %v548_v0 = vpop.permute.xlu1 %547 }
  0xce   : > { %571 = vst.msk [vmem:[#allocation2 + $0x8] sm:$0xff] %vm569_vm6, %v548_v0  ;;  %v546_v20 = vpop.permute.xlu0 %545  ;;  %v2596_v0 = vld [vmem:[%s2375_s30 + $0x80] sm:$0xff] }
  0xcf   : > { %570 = vst.msk [vmem:[#allocation2] sm:$0xff] %vm569_vm6, %v546_v20  ;;  %v2614_v20 = vld [vmem:[%s3244_s3] sm:$0xff] }
  0xd0   : > { %606 = vst.msk [vmem:[#allocation2] sm:$0xff] %vm605_vm7, %v582_v58  ;;  %1225 = vmatpush.msra.mxu1 %v2614_v20 }
  0xd2   : > { %817 = vrot.lane.b32.xlu2 %v2479_v21, %s2030_s8 }
  0xd3   : > { %815 = vrot.lane.b32.xlu1 %v2482_v22, %s2030_s8 }
  0xd4   : > { %813 = vrot.lane.b32.xlu0 %v2486_v23, %s2030_s8  ;;  %v594_v24 = vpop.permute.xlu2 %593 }
  0xd5   : > { %v554_v28 = vpop.permute.xlu1 %553 }
  0xd6   : > { %574 = vst.msk [vmem:[#allocation2 + $0x20] sm:$0xff] %vm569_vm6, %v554_v28  ;;  %v552_v30 = vpop.permute.xlu0 %551 }
  0xd7   : > { %573 = vst.msk [vmem:[#allocation2 + $0x18] sm:$0xff] %vm569_vm6, %v552_v30 }
  0xd8   : > { %609 = vst.msk [vmem:[#allocation2 + $0x18] sm:$0xff] %vm605_vm7, %v588_v18 }
  0xda   : > { %863 = vrot.lane.b32.xlu2 %v2502_v31, %s2031_s9 }
  0xdb   : > { %861 = vrot.lane.b32.xlu1 %v2505_v32, %s2031_s9 }
  0xdc   : > { %859 = vrot.lane.b32.xlu0 %v837_v33, %s2031_s9  ;;  %v618_v38 = vpop.permute.xlu2 %617 }
  0xdd   : > { %v560_v41 = vpop.permute.xlu1 %559 }
  0xde   : > { %577 = vst.msk [vmem:[#allocation2 + $0x38] sm:$0xff] %vm569_vm6, %v560_v41  ;;  %v558_v44 = vpop.permute.xlu0 %557  ;;  %v960_v41 = vrot.slane %v2596_v0, 2 }
  0xdf   : > { %576 = vst.msk [vmem:[#allocation2 + $0x30] sm:$0xff] %vm569_vm6, %v558_v44 }
  0xe0   : > { %612 = vst.msk [vmem:[#allocation2 + $0x30] sm:$0xff] %vm605_vm7, %v594_v24  ;;  %v925_v24 = vrot.slane %v2596_v0, 1 }
  0xe2   : > { %869 = vrot.lane.b32.xlu2 %v2522_v45, %s2031_s9 }
  0xe3   : > { %867 = vrot.lane.b32.xlu1 %v2525_v46, %s2031_s9 }
  0xe4   : > { %865 = vrot.lane.b32.xlu0 %v2529_v48, %s2031_s9  ;;  %v624_v50 = vpop.permute.xlu2 %623 }
  0xe5   : > { %v586_v55 = vpop.permute.xlu1 %585 }
  0xe6   : > { %608 = vst.msk [vmem:[#allocation2 + $0x10] sm:$0xff] %vm605_vm7, %v586_v55  ;;  %v584_v58 = vpop.permute.xlu0 %583 }
  0xe7   : > { %607 = vst.msk [vmem:[#allocation2 + $0x8] sm:$0xff] %vm605_vm7, %v584_v58 }
  0xe8   : > { %641 = vst.msk [vmem:[#allocation2 + $0x8] sm:$0xff] %vm639_vm8, %v618_v38 }
  0xea   : > { %892 = vrot.lane.b32.xlu2 %v2381_v34, %s2032_s10 }
  0xeb   : > { %873 = vrot.lane.b32.xlu1 %v2544_v59, %s2031_s9 }
  0xec   : > { %871 = vrot.lane.b32.xlu0 %v2548_v60, %s2031_s9  ;;  %v630_v61 = vpop.permute.xlu2 %629 }
  0xed   : > { %v592_v62 = vpop.permute.xlu1 %591 }
  0xee   : > { %611 = vst.msk [vmem:[#allocation2 + $0x28] sm:$0xff] %vm605_vm7, %v592_v62  ;;  %v590_v63 = vpop.permute.xlu0 %589 }
  0xef   : > { %610 = vst.msk [vmem:[#allocation2 + $0x20] sm:$0xff] %vm605_vm7, %v590_v63 }
  0xf0   : > { %644 = vst.msk [vmem:[#allocation2 + $0x20] sm:$0xff] %vm639_vm8, %v624_v50 }
  0xf2   : > { %898 = vrot.lane.b32.xlu2 %v2411_v49, %s2032_s10 }
  0xf3   : > { %896 = vrot.lane.b32.xlu1 %v2419_v52, %s2032_s10 }
  0xf4   : > { %894 = vrot.lane.b32.xlu0 %v2427_v54, %s2032_s10  ;;  %v657_v1 = vpop.permute.xlu2 %656 }
  0xf5   : > { %v616_v6 = vpop.permute.xlu1 %615 }
  0xf6   : > { %640 = vst.msk [vmem:[#allocation2] sm:$0xff] %vm639_vm8, %v616_v6  ;;  %v596_v9 = vpop.permute.xlu0 %595  ;;  %v1253_v6 = vld [vmem:[%s2712_s29 + $0x8] sm:$0x3] }
  0xf7   : > { %613 = vst.msk [vmem:[#allocation2 + $0x38] sm:$0xff] %vm605_vm7, %v596_v9  ;;  %v2727_v9 = vld [vmem:[%s2375_s30 + $0x90] sm:$0xff] }
  0xf8   : > { %647 = vst.msk [vmem:[#allocation2 + $0x38] sm:$0xff] %vm639_vm8, %v630_v61 }
  0xfa   : > { %904 = vrot.lane.b32.xlu2 %v2447_v5, %s2032_s10 }
  0xfb   : > { %902 = vrot.lane.b32.xlu1 %v2456_v8, %s2032_s10 }
  0xfc   : > { %900 = vrot.lane.b32.xlu0 %v2464_v10, %s2032_s10  ;;  %v663_v13 = vpop.permute.xlu2 %662 }
  0xfd   : > { %v622_v16 = vpop.permute.xlu1 %621 }
  0xfe   : > { %643 = vst.msk [vmem:[#allocation2 + $0x18] sm:$0xff] %vm639_vm8, %v622_v16  ;;  %v620_v18 = vpop.permute.xlu0 %619 }
  0xff   : > { %642 = vst.msk [vmem:[#allocation2 + $0x10] sm:$0xff] %vm639_vm8, %v620_v18 }
 0x100   : > { %679 = vst.msk [vmem:[#allocation2 + $0x10] sm:$0xff] %vm676_vm10, %v657_v1 }
 0x102   : > { %930 = vrot.lane.b32.xlu2 %v2453_v7, %s2033_s11 }
 0x103   : > { %928 = vrot.lane.b32.xlu1 %v2407_v47, %s2033_s11  ;;  %v752_v47 = vld [vmem:[%s2375_s30 + $0x88] sm:$0x3] }
 0x104   : > { %906 = vrot.lane.b32.xlu0 %v2596_v0, %s2032_s10  ;;  %v689_v19 = vpop.permute.xlu2 %688  ;;  %v926_v25 = vrot.slane %v752_v47, 1  ;;  %v961_v42 = vrot.slane %v752_v47, 2 }
 0x105   : > { %v628_v12 = vpop.permute.xlu1 %627 }
 0x106   : > { %646 = vst.msk [vmem:[#allocation2 + $0x30] sm:$0xff] %vm639_vm8, %v628_v12  ;;  %v626_v17 = vpop.permute.xlu0 %625  ;;  %v2631_v29 = vsel %vm391_vm0, %v925_v24, %v926_v25  ;;  %v2669_v51 = vsel %vm449_vm1, %v960_v41, %v961_v42 }
 0x107   : > { %645 = vst.msk [vmem:[#allocation2 + $0x28] sm:$0xff] %vm639_vm8, %v626_v17 }
 0x108   : > { %682 = vst.msk [vmem:[#allocation2 + $0x28] sm:$0xff] %vm676_vm10, %v663_v13  ;;  %v1297_v13 = vrot.slane %v1253_v6, 1 }
 0x10a   : > { %936 = vrot.lane.b32.xlu2 %v2486_v23, %s2033_s11 }
 0x10b   : > { %934 = vrot.lane.b32.xlu1 %v2440_v3, %s2033_s11 }
 0x10c   : > { %932 = vrot.lane.b32.xlu0 %v2443_v4, %s2033_s11  ;;  %v695_v26 = vpop.permute.xlu2 %694 }
 0x10d   : > { %v655_v28 = vpop.permute.xlu1 %654 }
 0x10e   : > { %678 = vst.msk [vmem:[#allocation2 + $0x8] sm:$0xff] %vm676_vm10, %v655_v28  ;;  %v653_v27 = vpop.permute.xlu0 %652 }
 0x10f   : > { %677 = vst.msk [vmem:[#allocation2] sm:$0xff] %vm676_vm10, %v653_v27 }
 0x110   : > { %713 = vst.msk [vmem:[#allocation2] sm:$0xff] %vm712_vm11, %v689_v19  ;;  %v1255_v19 = vld [vmem:[%s2712_s29 + $0x18] sm:$0x3] }
 0x111   : > { %v1300_v17 = vrot.slane %v1255_v19, 1 }
 0x112   : > { %942 = vrot.lane.b32.xlu2 %v2631_v29, %s2033_s11 }
 0x113   : > { %940 = vrot.lane.b32.xlu1 %v2479_v21, %s2033_s11 }
 0x114   : > { %938 = vrot.lane.b32.xlu0 %v2482_v22, %s2033_s11  ;;  %v701_v30 = vpop.permute.xlu2 %700 }
 0x115   : > { %v661_v33 = vpop.permute.xlu1 %660 }
 0x116   : > { %681 = vst.msk [vmem:[#allocation2 + $0x20] sm:$0xff] %vm676_vm10, %v661_v33  ;;  %v659_v35 = vpop.permute.xlu0 %658 }
 0x117   : > { %680 = vst.msk [vmem:[#allocation2 + $0x18] sm:$0xff] %vm676_vm10, %v659_v35  ;;  %v721_v37 = vld [vmem:[#allocation2] sm:$0xff]  ;;  %v1356_v35 = vrot.slane %v1255_v19, 2 }
 0x118   : > { %716 = vst.msk [vmem:[#allocation2 + $0x18] sm:$0xff] %vm712_vm11, %v695_v26  ;;  %1898 = vmatmul.msk.f32.vlgmr.msra.gmra.mxu1 %vm1113_vm12, %v721_v37  ;;  %v1353_v26 = vrot.slane %v1253_v6, 2 }
 0x119   : > { %755 = vst.msk [vmem:[#allocation2] sm:$0xff] %vm366_vm2, %v2387_v36 }
 0x11a   : > { %967 = vrot.lane.b32.xlu2 %v2529_v48, %s2034_s12 }
 0x11b   : > { %965 = vrot.lane.b32.xlu1 %v2502_v31, %s2034_s12 }
 0x11c   : > { %963 = vrot.lane.b32.xlu0 %v2505_v32, %s2034_s12  ;;  %v806_v38 = vpop.permute.xlu2 %805 }
 0x11d   : > { %v667_v39 = vpop.permute.xlu1 %666 }
 0x11e   : > { %684 = vst.msk [vmem:[#allocation2 + $0x38] sm:$0xff] %vm676_vm10, %v667_v39  ;;  %v665_v40 = vpop.permute.xlu0 %664 }
 0x11f   : > { %683 = vst.msk [vmem:[#allocation2 + $0x30] sm:$0xff] %vm676_vm10, %v665_v40  ;;  %v724_v36 = vld [vmem:[#allocation2 + $0x18] sm:$0xff]  ;;  %v1257_v40 = vld [vmem:[%s2712_s29 + $0x28] sm:$0x3] }
 0x120   : > { %719 = vst.msk [vmem:[#allocation2 + $0x30] sm:$0xff] %vm712_vm11, %v701_v30  ;;  %v1303_v41 = vrot.slane %v1257_v40, 1 }
 0x121   : > { %758 = vst.msk [vmem:[#allocation2 + $0x18] sm:$0xff] %vm366_vm2, %v2419_v52 }
 0x122   : > { %973 = vrot.lane.b32.xlu2 %v2548_v60, %s2034_s12 }
 0x123   : > { %971 = vrot.lane.b32.xlu1 %v2522_v45, %s2034_s12 }
 0x124   : > { %969 = vrot.lane.b32.xlu0 %v2525_v46, %s2034_s12  ;;  %v812_v32 = vpop.permute.xlu2 %811 }
 0x125   : > { %v693_v43 = vpop.permute.xlu1 %692 }
 0x126   : > { %715 = vst.msk [vmem:[#allocation2 + $0x10] sm:$0xff] %vm712_vm11, %v693_v43  ;;  %v691_v44 = vpop.permute.xlu0 %690 }
 0x127   : > { %714 = vst.msk [vmem:[#allocation2 + $0x8] sm:$0xff] %vm712_vm11, %v691_v44  ;;  %v2666_v50 = vld [vmem:[#allocation2 + $0x30] sm:$0xff] }
 0x128   : > { %761 = vst.msk [vmem:[#allocation2 + $0x30] sm:$0xff] %vm366_vm2, %v2456_v8 }
 0x12a   : > { %996 = vrot.lane.b32.xlu2 %v2427_v54, %s2035_s13 }
 0x12b   : > { %977 = vrot.lane.b32.xlu1 %v2669_v51, %s2034_s12 }
 0x12c   : > { %975 = vrot.lane.b32.xlu0 %v2544_v59, %s2034_s12  ;;  %v818_v53 = vpop.permute.xlu2 %817 }
 0x12d   : > { %v699_v55 = vpop.permute.xlu1 %698  ;;  %v723_v58 = vld [vmem:[#allocation2 + $0x10] sm:$0xff] }
 0x12e   : > { %718 = vst.msk [vmem:[#allocation2 + $0x28] sm:$0xff] %vm712_vm11, %v699_v55  ;;  %v697_v56 = vpop.permute.xlu0 %696  ;;  %v722_v57 = vld [vmem:[#allocation2 + $0x8] sm:$0xff]  ;;  %v1359_v55 = vrot.slane %v1257_v40, 2  ;;  %v1885_v40 = vld [vmem:[%s3244_s3 + $0x38] sm:$0xff] }
 0x12f   : > { %717 = vst.msk [vmem:[#allocation2 + $0x20] sm:$0xff] %vm712_vm11, %v697_v56  ;;  %1899 = vmatmul.msk.f32.gmra.mxu1 %vm1113_vm12, %v722_v57 }
 0x130   : > { %756 = vst.msk [vmem:[#allocation2 + $0x8] sm:$0xff] %vm366_vm2, %v2381_v34 }
 0x131   : > { %828 = vst.msk [vmem:[#allocation2 + $0x8] sm:$0xff] %vm440_vm3, %v806_v38  ;;  %v2768_v38 = vld [vmem:[%s2712_s29 + $0x20] sm:$0xff] }
 0x132   : > { %1002 = vrot.lane.b32.xlu2 %v2464_v10, %s2035_s13  ;;  %757 = vst.msk [vmem:[#allocation2 + $0x10] sm:$0xff] %vm366_vm2, %v2427_v54 }
 0x133   : > { %1000 = vrot.lane.b32.xlu1 %v2411_v49, %s2035_s13 }
 0x134   : > { %998 = vrot.lane.b32.xlu0 %v2419_v52, %s2035_s13  ;;  %v864_v61 = vpop.permute.xlu2 %863 }
 0x135   : > { %v804_v62 = vpop.permute.xlu1 %803  ;;  %v726_v63 = vld [vmem:[#allocation2 + $0x28] sm:$0xff] }
 0x136   : > { %827 = vst.msk [vmem:[#allocation2] sm:$0xff] %vm440_vm3, %v804_v62  ;;  %v703_v34 = vpop.permute.xlu0 %702  ;;  %v725_v54 = vld [vmem:[#allocation2 + $0x20] sm:$0xff] }
 0x137   : > { %720 = vst.msk [vmem:[#allocation2 + $0x38] sm:$0xff] %vm712_vm11, %v703_v34  ;;  %1900 = vmatmul.msk.f32.gmra.mxu1 %vm1113_vm12, %v723_v58 }
 0x138   : > { %760 = vst.msk [vmem:[#allocation2 + $0x28] sm:$0xff] %vm366_vm2, %v2464_v10 }
 0x139   : > { %759 = vst.msk [vmem:[#allocation2 + $0x20] sm:$0xff] %vm366_vm2, %v2411_v49 }
 0x13a   : > { %1008 = vrot.lane.b32.xlu2 %v2596_v0, %s2035_s13  ;;  %831 = vst.msk [vmem:[#allocation2 + $0x20] sm:$0xff] %vm440_vm3, %v812_v32  ;;  %v1302_v32 = vrot.slane %v2768_v38, 1 }
 0x13b   : > { %1006 = vrot.lane.b32.xlu1 %v2447_v5, %s2035_s13 }
 0x13c   : > { %1004 = vrot.lane.b32.xlu0 %v2456_v8, %s2035_s13  ;;  %v870_v52 = vpop.permute.xlu2 %869  ;;  %v2722_v8 = vld [vmem:[%s2712_s29] sm:$0xff]  ;;  %v2782_v44 = vsel %vm391_vm0, %v1302_v32, %v1303_v41  ;;  %v1884_v32 = vld [vmem:[%s3244_s3 + $0x30] sm:$0xff] }
 0x13d   : > { %v810_v1 = vpop.permute.xlu1 %809  ;;  %v1352_v25 = vrot.slane %v2722_v8, 2 }
 0x13e   : > { %v2714_v49 = vld [vmem:[#allocation2 + $0x38] sm:$0xff]  ;;  %830 = vst.msk [vmem:[#allocation2 + $0x18] sm:$0xff] %vm440_vm3, %v810_v1  ;;  %v808_v10 = vpop.permute.xlu0 %807 }
 0x13f   : > { %762 = vst.msk [vmem:[#allocation2 + $0x38] sm:$0xff] %vm366_vm2, %v2447_v5  ;;  %1901 = vmatmul.msk.f32.gmra.mxu1 %vm1113_vm12, %v724_v36  ;;  %v1296_v5 = vrot.slane %v2722_v8, 1 }
 0x140   : > { %834 = vst.msk [vmem:[#allocation2 + $0x38] sm:$0xff] %vm440_vm3, %v818_v53  ;;  %v1358_v53 = vrot.slane %v2768_v38, 2 }
 0x141   : > { %829 = vst.msk [vmem:[#allocation2 + $0x10] sm:$0xff] %vm440_vm3, %v808_v10 }
 0x142   : > { %885 = vst.msk [vmem:[#allocation2 + $0x10] sm:$0xff] %vm498_vm4, %v864_v61  ;;  %1067 = vrot.lane.b32.xlu2 %v2502_v31, %s2037_s16  ;;  %v1298_v31 = vsel %vm391_vm0, %v1296_v5, %v1297_v13  ;;  %v1029_v5 = vrot.slane %v2727_v9, 1 }
 0x143   : > { %1032 = vrot.lane.b32.xlu1 %v2453_v7, %s2036_s14  ;;  %v2743_v7 = vld [vmem:[%s2712_s29 + $0x10] sm:$0xff] }
 0x144   : > { %1010 = vrot.lane.b32.xlu0 %v2727_v9, %s2035_s13  ;;  %v893_v16 = vpop.permute.xlu2 %892  ;;  %v1299_v12 = vrot.slane %v2743_v7, 1  ;;  %v1355_v33 = vrot.slane %v2743_v7, 2 }
 0x145   : > { %v816_v18 = vpop.permute.xlu1 %815 }
 0x146   : > { %833 = vst.msk [vmem:[#allocation2 + $0x30] sm:$0xff] %vm440_vm3, %v816_v18  ;;  %v814_v0 = vpop.permute.xlu0 %813  ;;  %v1357_v39 = vsel %vm449_vm1, %v1355_v33, %v1356_v35  ;;  %v2860_v33 = vld [vmem:[%s2712_s29 + $0x40] sm:$0xff]  ;;  %v1887_v35 = vld [vmem:[%s3244_s3 + $0x48] sm:$0xf] }
 0x147   : > { %832 = vst.msk [vmem:[#allocation2 + $0x28] sm:$0xff] %vm440_vm3, %v814_v0  ;;  %1902 = vmatmul.msk.f32.gmra.mxu1 %vm1113_vm12, %v725_v54  ;;  %v1259_v54 = vld [vmem:[%s2712_s29 + $0x38] sm:$0x3]  ;;  %1888 = vmatpush.msk.msra.mxu0 %vm1138_vm9, %v1887_v35 }
 0x148   : > { %888 = vst.msk [vmem:[#allocation2 + $0x28] sm:$0xff] %vm498_vm4, %v870_v52  ;;  %v754_v52 = vld [vmem:[%s2375_s30 + $0x98] sm:$0x3]  ;;  %v1306_v6 = vrot.slane %v1259_v54, 1  ;;  %1922 = vmatpush.msk.msra.mxu3 %vm1138_vm9, %v1887_v35 }
 0x14a   : > { %1320 = vrot.lane.b32.xlu2 %v1298_v31, %s2030_s8 }
 0x14b   : > { %1069 = vrot.lane.b32.xlu1 %v2529_v48, %s2037_s16  ;;  %v1301_v48 = vsel %vm391_vm0, %v1299_v12, %v1300_v17  ;;  %v1362_v12 = vrot.slane %v1259_v54, 2  ;;  %v1064_v17 = vrot.slane %v2727_v9, 2  ;;  %v2944_v54 = vld [vmem:[%s2712_s29 + $0x60] sm:$0xff] }
 0x14c   : > { %1034 = vrot.lane.b32.xlu0 %v2443_v4, %s2036_s14  ;;  %v899_v47 = vpop.permute.xlu2 %898  ;;  %v1354_v4 = vsel %vm449_vm1, %v1352_v25, %v1353_v26 }
 0x14d   : > { %v862_v24 = vpop.permute.xlu1 %861 }
 0x14e   : > { %884 = vst.msk [vmem:[#allocation2 + $0x8] sm:$0xff] %vm498_vm4, %v862_v24  ;;  %v860_v28 = vpop.permute.xlu0 %859  ;;  %v1065_v24 = vrot.slane %v754_v52, 2 }
 0x14f   : > { %883 = vst.msk [vmem:[#allocation2] sm:$0xff] %vm498_vm4, %v860_v28  ;;  %1903 = vmatmul.msk.f32.gmra.mxu1 %vm1113_vm12, %v726_v63  ;;  %v2811_v63 = vld [vmem:[%s2712_s29 + $0x30] sm:$0xff] }
 0x150   : > { %916 = vst.msk [vmem:[#allocation2] sm:$0xff] %vm532_vm5, %v893_v16  ;;  %v1305_v10 = vrot.slane %v2811_v63, 1  ;;  %v1030_v16 = vrot.slane %v754_v52, 1  ;;  %v1361_v19 = vrot.slane %v2811_v63, 2  ;;  %v1066_v26 = vsel %vm449_vm1, %v1064_v17, %v1065_v24  ;;  %v1265_v52 = vld [vmem:[%s2712_s29 + $0x68] sm:$0x3] }
 0x151   : > { %v1370_v17 = vrot.slane %v2944_v54, 2 }
 0x152   : > { %1445 = vrot.lane.b32.xlu2 %v1301_v48, %s2033_s11  ;;  %v1031_v0 = vsel %vm391_vm0, %v1029_v5, %v1030_v16  ;;  %v2953_v5 = vld [vmem:[%s3244_s3 + $0x70] sm:$0xf] }
 0x153   : > { %1409 = vrot.lane.b32.xlu1 %v2743_v7, %s2032_s10  ;;  %1911 = vmatpush.msk.msra.mxu2 %vm1138_vm9, %v2953_v5 }
 0x154   : > { %1376 = vrot.lane.b32.xlu0 %v1354_v4, %s2031_s9  ;;  %v905_v27 = vpop.permute.xlu2 %904 }
 0x155   : > { %v868_v30 = vpop.permute.xlu1 %867 }
 0x156   : > { %887 = vst.msk [vmem:[#allocation2 + $0x20] sm:$0xff] %vm498_vm4, %v868_v30  ;;  %v866_v37 = vpop.permute.xlu0 %865 }
 0x157   : > { %886 = vst.msk [vmem:[#allocation2 + $0x18] sm:$0xff] %vm498_vm4, %v866_v37  ;;  %v1886_v37 = vld [vmem:[%s3244_s3 + $0x40] sm:$0xff] }
 0x158   : > { %919 = vst.msk [vmem:[#allocation2 + $0x18] sm:$0xff] %vm532_vm5, %v899_v47  ;;  %1154 = vmatpush.msra.mxu0 %v1886_v37  ;;  %1923 = vmatpush.msra.mxu3 %v1886_v37 }
 0x15a   : > { %1036 = vrot.lane.b32.xlu2 %v2440_v3, %s2036_s14  ;;  %1155 = vmatpush.msra.mxu0 %v1885_v40 }
 0x15b   : > { %1513 = vrot.lane.b32.xlu1 %v2768_v38, %s2035_s13  ;;  %1924 = vmatpush.msra.mxu3 %v1885_v40 }
 0x15c   : > { %1480 = vrot.lane.b32.xlu0 %v1357_v39, %s2034_s12  ;;  %v931_v36 = vpop.permute.xlu2 %930  ;;  %1156 = vmatpush.msra.mxu0 %v1884_v32 }
 0x15d   : > { %v874_v42 = vpop.permute.xlu1 %873  ;;  %1925 = vmatpush.msra.mxu3 %v1884_v32 }
 0x15e   : > { %890 = vst.msk [vmem:[#allocation2 + $0x38] sm:$0xff] %vm498_vm4, %v874_v42  ;;  %v872_v43 = vpop.permute.xlu0 %871 }
 0x15f   : > { %889 = vst.msk [vmem:[#allocation2 + $0x30] sm:$0xff] %vm498_vm4, %v872_v43  ;;  %v1364_v43 = vrot.slane %v2860_v33, 2 }
 0x160   : > { %922 = vst.msk [vmem:[#allocation2 + $0x30] sm:$0xff] %vm532_vm5, %v905_v27 }
 0x162   : > { %1071 = vrot.lane.b32.xlu2 %v2525_v46, %s2037_s16  ;;  %v1360_v46 = vsel %vm449_vm1, %v1358_v53, %v1359_v55  ;;  %v1883_v53 = vld [vmem:[%s3244_s3 + $0x28] sm:$0xff] }
 0x163   : > { %1549 = vrot.lane.b32.xlu1 %v2782_v44, %s2036_s14  ;;  %1157 = vmatpush.msra.mxu0 %v1883_v53 }
 0x164   : > { %1044 = vrot.lane.b32.xlu0 %v2631_v29, %s2036_s14  ;;  %v937_v3 = vpop.permute.xlu2 %936  ;;  %1926 = vmatpush.msra.mxu3 %v1883_v53 }
 0x165   : > { %v897_v56 = vpop.permute.xlu1 %896 }
 0x166   : > { %918 = vst.msk [vmem:[#allocation2 + $0x10] sm:$0xff] %vm532_vm5, %v897_v56  ;;  %v895_v57 = vpop.permute.xlu0 %894  ;;  %1927 = vmatpush.msk.msrb.mxu3 %vm1138_vm9, %v2577_v14 }
 0x167   : > { %917 = vst.msk [vmem:[#allocation2 + $0x8] sm:$0xff] %vm532_vm5, %v895_v57 }
 0x168   : > { %953 = vst.msk [vmem:[#allocation2 + $0x8] sm:$0xff] %vm569_vm6, %v931_v36  ;;  %1928 = vmatpush.msrb.mxu3 %v2586_v15 }
 0x16a   : > { %1322 = vrot.lane.b32.xlu2 %v1301_v48, %s2030_s8  ;;  %1929 = vmatpush.msrb.mxu3 %v2593_v2  ;;  %v2922_v2 = vld [vmem:[%s2712_s29 + $0x50] sm:$0xff] }
 0x16b   : > { %1584 = vrot.lane.b32.xlu1 %v1360_v46, %s2037_s16 }
 0x16c   : > { %1079 = vrot.lane.b32.xlu0 %v2669_v51, %s2037_s16  ;;  %v943_v29 = vpop.permute.xlu2 %942  ;;  %1930 = vmatpush.msrb.mxu3 %v2601_v11  ;;  %v1263_v11 = vld [vmem:[%s2712_s29 + $0x58] sm:$0x3] }
 0x16d   : > { %v903_v58 = vpop.permute.xlu1 %902  ;;  %v1368_v16 = vrot.slane %v1263_v11, 2 }
 0x16e   : > { %921 = vst.msk [vmem:[#allocation2 + $0x28] sm:$0xff] %vm532_vm5, %v903_v58  ;;  %v901_v61 = vpop.permute.xlu0 %900  ;;  %1931 = vmatpush.msrb.mxu3 %v2614_v20  ;;  %v1311_v58 = vrot.slane %v2922_v2, 1 }
 0x16f   : > { %920 = vst.msk [vmem:[#allocation2 + $0x20] sm:$0xff] %vm532_vm5, %v901_v61  ;;  %v1312_v61 = vrot.slane %v1263_v11, 1 }
 0x170   : > { %956 = vst.msk [vmem:[#allocation2 + $0x20] sm:$0xff] %vm569_vm6, %v937_v3 }
 0x172   : > { %1447 = vrot.lane.b32.xlu2 %v2782_v44, %s2033_s11 }
 0x173   : > { %1411 = vrot.lane.b32.xlu1 %v2768_v38, %s2032_s10 }
 0x174   : > { %1378 = vrot.lane.b32.xlu0 %v1357_v39, %s2031_s9  ;;  %v968_v51 = vpop.permute.xlu2 %967  ;;  %v1261_v39 = vld [vmem:[%s2712_s29 + $0x48] sm:$0x3] }
 0x175   : > { %v929_v62 = vpop.permute.xlu1 %928  ;;  %v1309_v42 = vrot.slane %v1261_v39, 1 }
 0x176   : > { %952 = vst.msk [vmem:[#allocation2] sm:$0xff] %vm569_vm6, %v929_v62  ;;  %v907_v34 = vpop.permute.xlu0 %906 }
 0x177   : > { %923 = vst.msk [vmem:[#allocation2 + $0x38] sm:$0xff] %vm532_vm5, %v907_v34  ;;  %v2937_v34 = vsel %vm391_vm0, %v1311_v58, %v1312_v61 }
 0x178   : > { %959 = vst.msk [vmem:[#allocation2 + $0x38] sm:$0xff] %vm569_vm6, %v943_v29 }
 0x17a   : > { %1038 = vrot.lane.b32.xlu2 %v2486_v23, %s2036_s14  ;;  %v2826_v23 = vsel %vm391_vm0, %v1305_v10, %v1306_v6  ;;  %v1314_v10 = vrot.slane %v2944_v54, 1  ;;  %v1315_v6 = vrot.slane %v1265_v52, 1 }
 0x17b   : > { %1515 = vrot.lane.b32.xlu1 %v2811_v63, %s2035_s13 }
 0x17c   : > { %1482 = vrot.lane.b32.xlu0 %v1360_v46, %s2034_s12  ;;  %v974_v1 = vpop.permute.xlu2 %973 }
 0x17d   : > { %v935_v13 = vpop.permute.xlu1 %934 }
 0x17e   : > { %955 = vst.msk [vmem:[#allocation2 + $0x18] sm:$0xff] %vm569_vm6, %v935_v13  ;;  %v933_v18 = vpop.permute.xlu0 %932 }
 0x17f   : > { %954 = vst.msk [vmem:[#allocation2 + $0x10] sm:$0xff] %vm569_vm6, %v933_v18 }
 0x180   : > { %989 = vst.msk [vmem:[#allocation2 + $0x10] sm:$0xff] %vm605_vm7, %v968_v51 }
 0x182   : > { %1073 = vrot.lane.b32.xlu2 %v2522_v45, %s2037_s16  ;;  %v2840_v45 = vsel %vm449_vm1, %v1361_v19, %v1362_v12  ;;  %v2984_v12 = vld [vmem:[%s3244_s3 + $0x58] sm:$0xff] }
 0x183   : > { %1551 = vrot.lane.b32.xlu1 %v2826_v23, %s2036_s14 }
 0x184   : > { %1046 = vrot.lane.b32.xlu0 %v1031_v0, %s2036_s14  ;;  %v997_v31 = vpop.permute.xlu2 %996  ;;  %v2967_v0 = vld [vmem:[%s3244_s3 + $0x68] sm:$0xff] }
 0x185   : > { %v941_v47 = vpop.permute.xlu1 %940  ;;  %1669 = vmatpush.msra.mxu2 %v2967_v0 }
 0x186   : > { %958 = vst.msk [vmem:[#allocation2 + $0x30] sm:$0xff] %vm569_vm6, %v941_v47  ;;  %v939_v25 = vpop.permute.xlu0 %938  ;;  %v1371_v47 = vrot.slane %v1265_v52, 2 }
 0x187   : > { %957 = vst.msk [vmem:[#allocation2 + $0x28] sm:$0xff] %vm569_vm6, %v939_v25  ;;  %v2999_v25 = vld [vmem:[%s3244_s3 + $0x50] sm:$0xff] }
 0x188   : > { %992 = vst.msk [vmem:[#allocation2 + $0x28] sm:$0xff] %vm605_vm7, %v974_v1 }
 0x18a   : > { %1324 = vrot.lane.b32.xlu2 %v2782_v44, %s2030_s8  ;;  %v1365_v44 = vrot.slane %v1261_v39, 2 }
 0x18b   : > { %1586 = vrot.lane.b32.xlu1 %v2840_v45, %s2037_s16 }
 0x18c   : > { %1081 = vrot.lane.b32.xlu0 %v1066_v26, %s2037_s16  ;;  %v1003_v9 = vpop.permute.xlu2 %1002  ;;  %v2895_v56 = vsel %vm449_vm1, %v1364_v43, %v1365_v44  ;;  %v1269_v44 = vld [vmem:[%s2712_s29 + $0x88] sm:$0x3] }
 0x18d   : > { %v966_v28 = vpop.permute.xlu1 %965  ;;  %v1443_v53 = vrot.slane %v1269_v44, 1 }
 0x18e   : > { %988 = vst.msk [vmem:[#allocation2 + $0x8] sm:$0xff] %vm605_vm7, %v966_v28  ;;  %v964_v48 = vpop.permute.xlu0 %963  ;;  %v3009_v28 = vsel %vm449_vm1, %v1370_v17, %v1371_v47 }
 0x18f   : > { %987 = vst.msk [vmem:[#allocation2] sm:$0xff] %vm605_vm7, %v964_v48 }
 0x190   : > { %1020 = vst.msk [vmem:[#allocation2] sm:$0xff] %vm639_vm8, %v997_v31  ;;  %v2972_v31 = vld [vmem:[%s3244_s3 + $0x60] sm:$0xff] }
 0x191   : > { %1670 = vmatpush.msra.mxu2 %v2972_v31 }
 0x192   : > { %1449 = vrot.lane.b32.xlu2 %v2826_v23, %s2033_s11 }
 0x193   : > { %1413 = vrot.lane.b32.xlu1 %v2811_v63, %s2032_s10  ;;  %1671 = vmatpush.msra.mxu2 %v2984_v12 }
 0x194   : > { %1380 = vrot.lane.b32.xlu0 %v1360_v46, %s2031_s9  ;;  %v1009_v4 = vpop.permute.xlu2 %1008 }
 0x195   : > { %v972_v27 = vpop.permute.xlu1 %971  ;;  %1672 = vmatpush.msra.mxu2 %v2999_v25 }
 0x196   : > { %991 = vst.msk [vmem:[#allocation2 + $0x20] sm:$0xff] %vm605_vm7, %v972_v27  ;;  %v970_v30 = vpop.permute.xlu0 %969 }
 0x197   : > { %990 = vst.msk [vmem:[#allocation2 + $0x18] sm:$0xff] %vm605_vm7, %v970_v30 }
 0x198   : > { %1023 = vst.msk [vmem:[#allocation2 + $0x18] sm:$0xff] %vm639_vm8, %v1003_v9 }
 0x19a   : > { %1040 = vrot.lane.b32.xlu2 %v2482_v22, %s2036_s14  ;;  %v1308_v22 = vrot.slane %v2860_v33, 1 }
 0x19b   : > { %1517 = vrot.lane.b32.xlu1 %v2860_v33, %s2035_s13 }
 0x19c   : > { %1484 = vrot.lane.b32.xlu0 %v2840_v45, %s2034_s12  ;;  %v1068_v36 = vpop.permute.xlu2 %1067  ;;  %v2892_v55 = vsel %vm391_vm0, %v1308_v22, %v1309_v42  ;;  %v1268_v42 = vld [vmem:[%s2712_s29 + $0x80] sm:$0xff] }
 0x19d   : > { %v978_v41 = vpop.permute.xlu1 %977  ;;  %v1442_v43 = vrot.slane %v1268_v42, 1 }
 0x19e   : > { %994 = vst.msk [vmem:[#allocation2 + $0x38] sm:$0xff] %vm605_vm7, %v978_v41  ;;  %v976_v3 = vpop.permute.xlu0 %975 }
 0x19f   : > { %993 = vst.msk [vmem:[#allocation2 + $0x30] sm:$0xff] %vm605_vm7, %v976_v3 }
 0x1a0   : > { %1026 = vst.msk [vmem:[#allocation2 + $0x30] sm:$0xff] %vm639_vm8, %v1009_v4 }
 0x1a2   : > { %1588 = vrot.lane.b32.xlu2 %v2895_v56, %s2037_s16 }
 0x1a3   : > { %1075 = vrot.lane.b32.xlu1 %v2548_v60, %s2037_s16 }
 0x1a4   : > { %1553 = vrot.lane.b32.xlu0 %v2892_v55, %s2036_s14  ;;  %v1321_v57 = vpop.permute.xlu2 %1320 }
 0x1a5   : > { %v1001_v46 = vpop.permute.xlu1 %1000 }
 0x1a6   : > { %1022 = vst.msk [vmem:[#allocation2 + $0x10] sm:$0xff] %vm639_vm8, %v1001_v46  ;;  %v999_v29 = vpop.permute.xlu0 %998  ;;  %v1477_v46 = vrot.slane %v1268_v42, 2 }
 0x1a7   : > { %1021 = vst.msk [vmem:[#allocation2 + $0x8] sm:$0xff] %vm639_vm8, %v999_v29 }
 0x1aa   : > { %1415 = vrot.lane.b32.xlu2 %v2860_v33, %s2032_s10 }
 0x1ab   : > { %1382 = vrot.lane.b32.xlu1 %v2840_v45, %s2031_s9 }
 0x1ac   : > { %1326 = vrot.lane.b32.xlu0 %v2826_v23, %s2030_s8  ;;  %v2917_v60 = vpop.permute.xlu2 %1445  ;;  %v2962_v23 = vsel %vm391_vm0, %v1314_v10, %v1315_v6 }
 0x1ad   : > { %v1007_v14 = vpop.permute.xlu1 %1006 }
 0x1ae   : > { %1025 = vst.msk [vmem:[#allocation2 + $0x28] sm:$0xff] %vm639_vm8, %v1007_v14  ;;  %v1005_v15 = vpop.permute.xlu0 %1004 }
 0x1af   : > { %1024 = vst.msk [vmem:[#allocation2 + $0x20] sm:$0xff] %vm639_vm8, %v1005_v15 }
 0x1b2   : > { %1519 = vrot.lane.b32.xlu2 %v2922_v2, %s2035_s13 }
 0x1b3   : > { %1486 = vrot.lane.b32.xlu1 %v2895_v56, %s2034_s12 }
 0x1b4   : > { %1451 = vrot.lane.b32.xlu0 %v2892_v55, %s2033_s11  ;;  %v1037_v20 = vpop.permute.xlu2 %1036 }
 0x1b5   : > { %v1033_v51 = vpop.permute.xlu1 %1032  ;;  %1058 = vst.msk [vmem:[#allocation2 + $0x10] sm:$0xff] %vm676_vm10, %v1037_v20 }
 0x1b6   : > { %1056 = vst.msk [vmem:[#allocation2] sm:$0xff] %vm676_vm10, %v1033_v51  ;;  %v1011_v62 = vpop.permute.xlu0 %1010 }
 0x1b7   : > { %1091 = vst.msk [vmem:[#allocation2] sm:$0xff] %vm712_vm11, %v1068_v36 }
 0x1b8   : > { %1027 = vst.msk [vmem:[#allocation2 + $0x38] sm:$0xff] %vm639_vm8, %v1011_v62 }
 0x1ba   : > { %1077 = vrot.lane.b32.xlu2 %v2544_v59, %s2037_s16  ;;  %v1367_v59 = vrot.slane %v2922_v2, 2 }
 0x1bb   : > { %1555 = vrot.lane.b32.xlu1 %v2937_v34, %s2036_s14 }
 0x1bc   : > { %1042 = vrot.lane.b32.xlu0 %v2479_v21, %s2036_s14  ;;  %v1072_v1 = vpop.permute.xlu2 %1071  ;;  %v2979_v19 = vsel %vm449_vm1, %v1367_v59, %v1368_v16 }
 0x1bd   : > { %v1070_v13 = vpop.permute.xlu1 %1069  ;;  %1093 = vst.msk [vmem:[#allocation2 + $0x10] sm:$0xff] %vm712_vm11, %v1072_v1 }
 0x1be   : > { %v1035_v18 = vpop.permute.xlu0 %1034  ;;  %v1099_v21 = vld [vmem:[#allocation2] sm:$0xff] }
 0x1bf   : > { %1057 = vst.msk [vmem:[#allocation2 + $0x8] sm:$0xff] %vm676_vm10, %v1035_v18  ;;  %1889 = vmatmul.msk.f32.vlgmr.msra.gmra.mxu0 %vm1113_vm12, %v1099_v21  ;;  %v1270_v21 = vld [vmem:[%s2712_s29 + $0x90] sm:$0xff] }
 0x1c0   : > { %1092 = vst.msk [vmem:[#allocation2 + $0x8] sm:$0xff] %vm712_vm11, %v1070_v13 }
 0x1c1   : > { %1272 = vst.msk [vmem:[#allocation2] sm:$0xff] %vm366_vm2, %v2722_v8 }
 0x1c2   : > { %1344 = vst.msk [vmem:[#allocation2] sm:$0xff] %vm440_vm3, %v1321_v57  ;;  %1332 = vrot.lane.b32.xlu2 %v2962_v23, %s2030_s8  ;;  %v1444_v57 = vsel %vm391_vm0, %v1442_v43, %v1443_v53 }
 0x1c3   : > { %1328 = vrot.lane.b32.xlu1 %v2892_v55, %s2030_s8 }
 0x1c4   : > { %1590 = vrot.lane.b32.xlu0 %v2979_v19, %s2037_s16  ;;  %v1323_v8 = vpop.permute.xlu2 %1322  ;;  %v1101_v24 = vld [vmem:[#allocation2 + $0x10] sm:$0xff] }
 0x1c5   : > { %v1410_v45 = vpop.permute.xlu1 %1409  ;;  %1274 = vst.msk [vmem:[#allocation2 + $0x10] sm:$0xff] %vm366_vm2, %v2768_v38  ;;  %v3020_v38 = vld [vmem:[%s2712_s29 + $0x70] sm:$0xff] }
 0x1c6   : > { %v1377_v26 = vpop.permute.xlu0 %1376  ;;  %v1317_v4 = vrot.slane %v3020_v38, 1  ;;  %v1373_v40 = vrot.slane %v3020_v38, 2 }
 0x1c7   : > { %v1100_v9 = vld [vmem:[#allocation2 + $0x8] sm:$0xff]  ;;  %1400 = vst.msk [vmem:[#allocation2] sm:$0xff] %vm498_vm4, %v1377_v26 }
 0x1c8   : > { %1273 = vst.msk [vmem:[#allocation2 + $0x8] sm:$0xff] %vm366_vm2, %v2743_v7  ;;  %1890 = vmatmul.msk.f32.gmra.mxu0 %vm1113_vm12, %v1100_v9  ;;  %v1267_v7 = vld [vmem:[%s2712_s29 + $0x78] sm:$0x3] }
 0x1c9   : > { %1345 = vst.msk [vmem:[#allocation2 + $0x8] sm:$0xff] %vm440_vm3, %v1323_v8  ;;  %v1318_v27 = vrot.slane %v1267_v7, 1  ;;  %v1374_v36 = vrot.slane %v1267_v7, 2 }
 0x1ca   : > { %1433 = vst.msk [vmem:[#allocation2] sm:$0xff] %vm532_vm5, %v1410_v45  ;;  %1417 = vrot.lane.b32.xlu2 %v2922_v2, %s2032_s10 }
 0x1cb   : > { %1469 = vst.msk [vmem:[#allocation2] sm:$0xff] %vm569_vm6, %v2917_v60  ;;  %1388 = vrot.lane.b32.xlu1 %v3009_v28, %s2031_s9  ;;  %v3028_v37 = vsel %vm391_vm0, %v1317_v4, %v1318_v27  ;;  %v3043_v22 = vsel %vm449_vm1, %v1373_v40, %v1374_v36  ;;  %v1478_v60 = vrot.slane %v1269_v44, 2 }
 0x1cc   : > { %1384 = vrot.lane.b32.xlu0 %v2895_v56, %s2031_s9  ;;  %v1448_v48 = vpop.permute.xlu2 %1447 }
 0x1cd   : > { %v1514_v30 = vpop.permute.xlu1 %1513  ;;  %v1479_v61 = vsel %vm449_vm1, %v1477_v46, %v1478_v60 }
 0x1ce   : > { %v1481_v35 = vpop.permute.xlu0 %1480 }
 0x1cf   : > { %1504 = vst.msk [vmem:[#allocation2] sm:$0xff] %vm605_vm7, %v1481_v35 }
 0x1d0   : > { %1537 = vst.msk [vmem:[#allocation2] sm:$0xff] %vm639_vm8, %v1514_v30  ;;  %1891 = vmatmul.msk.f32.gmra.mxu0 %vm1113_vm12, %v1101_v24 }
 0x1d2   : > { %1457 = vrot.lane.b32.xlu2 %v3028_v37, %s2033_s11 }
 0x1d3   : > { %1453 = vrot.lane.b32.xlu1 %v2937_v34, %s2033_s11 }
 0x1d4   : > { %1421 = vrot.lane.b32.xlu0 %v3020_v38, %s2032_s10  ;;  %v1039_v39 = vpop.permute.xlu2 %1038 }
 0x1d5   : > { %v1550_v32 = vpop.permute.xlu1 %1549  ;;  %1059 = vst.msk [vmem:[#allocation2 + $0x18] sm:$0xff] %vm676_vm10, %v1039_v39 }
 0x1d6   : > { %1573 = vst.msk [vmem:[#allocation2] sm:$0xff] %vm676_vm10, %v1550_v32  ;;  %v1045_v41 = vpop.permute.xlu0 %1044 }
 0x1d7   : > { %1062 = vst.msk [vmem:[#allocation2 + $0x30] sm:$0xff] %vm676_vm10, %v1045_v41 }
 0x1da   : > { %1521 = vrot.lane.b32.xlu2 %v2944_v54, %s2035_s13 }
 0x1db   : > { %1492 = vrot.lane.b32.xlu1 %v3043_v22, %s2034_s12 }
 0x1dc   : > { %1488 = vrot.lane.b32.xlu0 %v2979_v19, %s2034_s12  ;;  %v1074_v3 = vpop.permute.xlu2 %1073 }
 0x1dd   : > { %v1585_v55 = vpop.permute.xlu1 %1584  ;;  %1094 = vst.msk [vmem:[#allocation2 + $0x18] sm:$0xff] %vm712_vm11, %v1074_v3 }
 0x1de   : > { %1608 = vst.msk [vmem:[#allocation2] sm:$0xff] %vm712_vm11, %v1585_v55  ;;  %v1080_v56 = vpop.permute.xlu0 %1079 }
 0x1df   : > { %1097 = vst.msk [vmem:[#allocation2 + $0x30] sm:$0xff] %vm712_vm11, %v1080_v56 }
 0x1e2   : > { %1561 = vrot.lane.b32.xlu2 %v1444_v57, %s2036_s14 }
 0x1e3   : > { %1557 = vrot.lane.b32.xlu1 %v2962_v23, %s2036_s14 }
 0x1e4   : > { %1525 = vrot.lane.b32.xlu0 %v1268_v42, %s2035_s13  ;;  %v1102_v29 = vld [vmem:[#allocation2 + $0x18] sm:$0xff]  ;;  %v1325_v14 = vpop.permute.xlu2 %1324 }
 0x1e5   : > { %v1412_v15 = vpop.permute.xlu1 %1411  ;;  %1892 = vmatmul.msk.f32.gmra.mxu0 %vm1113_vm12, %v1102_v29  ;;  %1275 = vst.msk [vmem:[#allocation2 + $0x18] sm:$0xff] %vm366_vm2, %v2811_v63  ;;  %v1616_v11 = vld [vmem:[#allocation2] sm:$0xff] }
 0x1e6   : > { %v1379_v20 = vpop.permute.xlu0 %1378  ;;  %v1105_v58 = vld [vmem:[#allocation2 + $0x30] sm:$0xff]  ;;  %1912 = vmatmul.msk.f32.vlgmr.msra.gmra.mxu2 %vm1113_vm12, %v1616_v11  ;;  %1346 = vst.msk [vmem:[#allocation2 + $0x10] sm:$0xff] %vm440_vm3, %v1325_v14 }
 0x1e7   : > { %1401 = vst.msk [vmem:[#allocation2 + $0x8] sm:$0xff] %vm498_vm4, %v1379_v20  ;;  %1895 = vmatmul.msk.f32.vlgmr.msra.gmra.mxu3 %vm1113_vm12, %v1105_v58  ;;  %v1227_v58 = vpop.f32.mrf.mxu1 }
 0x1e8   : > { %1434 = vst.msk [vmem:[#allocation2 + $0x8] sm:$0xff] %vm532_vm5, %v1412_v15  ;;  %1932 = vmatpush.msk.msra.mxu3 %vm1138_vm9, %v2953_v5 }
 0x1e9   : > { %1470 = vst.msk [vmem:[#allocation2 + $0x8] sm:$0xff] %vm569_vm6, %v1448_v48 }
 0x1ea   : > { %1278 = vst.msk [vmem:[#allocation2 + $0x30] sm:$0xff] %vm366_vm2, %v2944_v54  ;;  %1330 = vrot.lane.b32.xlu2 %v2937_v34, %s2030_s8  ;;  %1933 = vmatpush.msra.mxu3 %v2967_v0  ;;  %v1581_v0 = vrot.slane %v1270_v21, 2 }
 0x1eb   : > { %1596 = vrot.lane.b32.xlu1 %v1479_v61, %s2037_s16 }
 0x1ec   : > { %1592 = vrot.lane.b32.xlu0 %v3009_v28, %s2037_s16  ;;  %v1450_v63 = vpop.permute.xlu2 %1449  ;;  %1934 = vmatpush.msra.mxu3 %v2972_v31 }
 0x1ed   : > { %v1516_v51 = vpop.permute.xlu1 %1515 }
 0x1ee   : > { %v1483_v62 = vpop.permute.xlu0 %1482  ;;  %1935 = vmatpush.msra.mxu3 %v2984_v12  ;;  %v1546_v12 = vrot.slane %v1270_v21, 1 }
 0x1ef   : > { %1505 = vst.msk [vmem:[#allocation2 + $0x8] sm:$0xff] %vm605_vm7, %v1483_v62 }
 0x1f0   : > { %1538 = vst.msk [vmem:[#allocation2 + $0x8] sm:$0xff] %vm639_vm8, %v1516_v51  ;;  %1936 = vmatpush.msra.mxu3 %v2999_v25  ;;  %v3181_v51 = vld [vmem:[%s3245_s4] ss:$0 sm:$0xff] }
 0x1f2   : > { %1390 = vrot.lane.b32.xlu2 %v3043_v22, %s2031_s9 }
 0x1f3   : > { %1386 = vrot.lane.b32.xlu1 %v2979_v19, %s2031_s9  ;;  %s1881_s9 = sshll.u32 %s3258_s19, 6 }
 0x1f4   : > { %1334 = vrot.lane.b32.xlu0 %v3028_v37, %s2030_s8  ;;  %v1041_v34 = vpop.permute.xlu2 %1040  ;;  %s1880_s8 = sshll.u32 %s3264_s18, 3 }
 0x1f5   : > { %v1552_v52 = vpop.permute.xlu1 %1551  ;;  %1060 = vst.msk [vmem:[#allocation2 + $0x20] sm:$0xff] %vm676_vm10, %v1041_v34 }
 0x1f6   : > { %1574 = vst.msk [vmem:[#allocation2 + $0x8] sm:$0xff] %vm676_vm10, %v1552_v52  ;;  %v1047_v1 = vpop.permute.xlu0 %1046 }
 0x1f7   : > { %1063 = vst.msk [vmem:[#allocation2 + $0x38] sm:$0xff] %vm676_vm10, %v1047_v1 }
 0x1fa   : > { %1455 = vrot.lane.b32.xlu2 %v2962_v23, %s2033_s11  ;;  %v1271_v23 = vld [vmem:[%s2712_s29 + $0x98] sm:$0x3] }
 0x1fb   : > { %1423 = vrot.lane.b32.xlu1 %v1268_v42, %s2032_s10  ;;  %v1582_v31 = vrot.slane %v1271_v23, 2  ;;  %v1547_v17 = vrot.slane %v1271_v23, 1 }
 0x1fc   : > { %1419 = vrot.lane.b32.xlu0 %v2944_v54, %s2032_s10  ;;  %v1589_v10 = vpop.permute.xlu2 %1588  ;;  %s340_s10 = sadd.s32 %s1881_s9, %s1880_s8 }
 0x1fd   : > { %v1587_v6 = vpop.permute.xlu1 %1586  ;;  %v1583_v24 = vsel %vm449_vm1, %v1581_v0, %v1582_v31  ;;  %v1548_v25 = vsel %vm391_vm0, %v1546_v12, %v1547_v17 }
 0x1fe   : > { %1609 = vst.msk [vmem:[#allocation2 + $0x8] sm:$0xff] %vm712_vm11, %v1587_v6  ;;  %v1082_v5 = vpop.permute.xlu0 %1081 }
 0x1ff   : > { %1098 = vst.msk [vmem:[#allocation2 + $0x38] sm:$0xff] %vm712_vm11, %v1082_v5 }
 0x202   : > { %1494 = vrot.lane.b32.xlu2 %v1479_v61, %s2034_s12 }
 0x203   : > { %1490 = vrot.lane.b32.xlu1 %v3009_v28, %s2034_s12 }
 0x204   : > { %1459 = vrot.lane.b32.xlu0 %v1444_v57, %s2033_s11  ;;  %v1416_v13 = vpop.permute.xlu2 %1415  ;;  %s1882_s11 = sshll.u32 %s340_s10, 3 }
 0x205   : > { %v1414_v59 = vpop.permute.xlu1 %1413  ;;  %v1617_v16 = vld [vmem:[#allocation2 + $0x8] sm:$0xff] }
 0x206   : > { %v1381_v54 = vpop.permute.xlu0 %1380  ;;  %v1106_v18 = vld [vmem:[#allocation2 + $0x38] sm:$0xff]  ;;  %1913 = vmatmul.msk.f32.gmra.mxu2 %vm1113_vm12, %v1617_v16 }
 0x207   : > { %1402 = vst.msk [vmem:[#allocation2 + $0x10] sm:$0xff] %vm498_vm4, %v1381_v54  ;;  %1896 = vmatmul.msk.f32.gmra.mxu3 %vm1113_vm12, %v1106_v18 }
 0x208   : > { %1435 = vst.msk [vmem:[#allocation2 + $0x10] sm:$0xff] %vm532_vm5, %v1414_v59 }
 0x209   : > { %1471 = vst.msk [vmem:[#allocation2 + $0x10] sm:$0xff] %vm569_vm6, %v1450_v63 }
 0x20a   : > { %1279 = vst.msk [vmem:[#allocation2 + $0x38] sm:$0xff] %vm366_vm2, %v3020_v38  ;;  %1559 = vrot.lane.b32.xlu2 %v3028_v37, %s2036_s14 }
 0x20b   : > { %1527 = vrot.lane.b32.xlu1 %v1270_v21, %s2035_s13 }
 0x20c   : > { %1523 = vrot.lane.b32.xlu0 %v3020_v38, %s2035_s13  ;;  %v1520_v19 = vpop.permute.xlu2 %1519 }
 0x20d   : > { %v1518_v8 = vpop.permute.xlu1 %1517 }
 0x20e   : > { %v1485_v47 = vpop.permute.xlu0 %1484 }
 0x20f   : > { %1506 = vst.msk [vmem:[#allocation2 + $0x10] sm:$0xff] %vm605_vm7, %v1485_v47  ;;  %1904 = vmatmul.msk.f32.vlgmr.msrb.gmra.mxu3 %vm1113_vm12, %v2666_v50 }
 0x210   : > { %1539 = vst.msk [vmem:[#allocation2 + $0x10] sm:$0xff] %vm639_vm8, %v1518_v8 }
 0x212   : > { %1598 = vrot.lane.b32.xlu2 %v1583_v24, %s2037_s16 }
 0x213   : > { %1594 = vrot.lane.b32.xlu1 %v3043_v22, %s2037_s16 }
 0x214   : > { %1563 = vrot.lane.b32.xlu0 %v1548_v25, %s2036_s14  ;;  %v1078_v45 = vpop.permute.xlu2 %1077  ;;  %s3187_s14 = scalar_lea.vmem %s3246_s5, %s1882_s11 }
 0x215   : > { %v1076_v26 = vpop.permute.xlu1 %1075 }
 0x216   : > { %1095 = vst.msk [vmem:[#allocation2 + $0x20] sm:$0xff] %vm712_vm11, %v1076_v26  ;;  %v1554_v9 = vpop.permute.xlu0 %1553 }
 0x217   : > { %1575 = vst.msk [vmem:[#allocation2 + $0x10] sm:$0xff] %vm676_vm10, %v1554_v9  ;;  %1905 = vmatmul.msk.f32.gmra.mxu3 %vm1113_vm12, %v2714_v49 }
 0x218   : > { %1610 = vst.msk [vmem:[#allocation2 + $0x10] sm:$0xff] %vm712_vm11, %v1589_v10 }
 0x21c   : > { %v1333_v50 = vpop.permute.xlu2 %1332 }
 0x21d   : > { %v1383_v28 = vpop.permute.xlu1 %1382  ;;  %v1103_v38 = vld [vmem:[#allocation2 + $0x20] sm:$0xff]  ;;  %1350 = vst.msk [vmem:[#allocation2 + $0x30] sm:$0xff] %vm440_vm3, %v1333_v50 }
 0x21e   : > { %v1327_v7 = vpop.permute.xlu0 %1326  ;;  %1893 = vmatmul.msk.f32.gmra.mxu0 %vm1113_vm12, %v1103_v38  ;;  %1276 = vst.msk [vmem:[#allocation2 + $0x20] sm:$0xff] %vm366_vm2, %v2860_v33 }
 0x21f   : > { %1347 = vst.msk [vmem:[#allocation2 + $0x18] sm:$0xff] %vm440_vm3, %v1327_v7  ;;  %v1618_v48 = vld [vmem:[#allocation2 + $0x10] sm:$0xff] }
 0x220   : > { %1403 = vst.msk [vmem:[#allocation2 + $0x18] sm:$0xff] %vm498_vm4, %v1383_v28  ;;  %1914 = vmatmul.msk.f32.gmra.mxu2 %vm1113_vm12, %v1618_v48 }
 0x221   : > { %1436 = vst.msk [vmem:[#allocation2 + $0x18] sm:$0xff] %vm532_vm5, %v1416_v13 }
 0x224   : > { %v1418_v49 = vpop.permute.xlu2 %1417 }
 0x225   : > { %v1487_v4 = vpop.permute.xlu1 %1486 }
 0x226   : > { %v1452_v27 = vpop.permute.xlu0 %1451 }
 0x227   : > { %1472 = vst.msk [vmem:[#allocation2 + $0x18] sm:$0xff] %vm569_vm6, %v1452_v27 }
 0x228   : > { %1507 = vst.msk [vmem:[#allocation2 + $0x18] sm:$0xff] %vm605_vm7, %v1487_v4 }
 0x229   : > { %1540 = vst.msk [vmem:[#allocation2 + $0x18] sm:$0xff] %vm639_vm8, %v1520_v19  ;;  %v1230_v19 = vpop.f32.mrf.mxu1 }
 0x22c   : > { %v1458_v30 = vpop.permute.xlu2 %1457 }
 0x22d   : > { %v1556_v33 = vpop.permute.xlu1 %1555 }
 0x22e   : > { %1576 = vst.msk [vmem:[#allocation2 + $0x18] sm:$0xff] %vm676_vm10, %v1556_v33  ;;  %v1043_v35 = vpop.permute.xlu0 %1042 }
 0x22f   : > { %1061 = vst.msk [vmem:[#allocation2 + $0x28] sm:$0xff] %vm676_vm10, %v1043_v35 }
 0x230   : > { %1096 = vst.msk [vmem:[#allocation2 + $0x28] sm:$0xff] %vm712_vm11, %v1078_v45 }
 0x231   : > { %v1233_v9 = vpop.f32.mrf.mxu1 }
 0x234   : > { %v1522_v37 = vpop.permute.xlu2 %1521 }
 0x235   : > { %v1329_v39 = vpop.permute.xlu1 %1328 }
 0x236   : > { %1348 = vst.msk [vmem:[#allocation2 + $0x20] sm:$0xff] %vm440_vm3, %v1329_v39  ;;  %v1591_v40 = vpop.permute.xlu0 %1590 }
 0x237   : > { %1611 = vst.msk [vmem:[#allocation2 + $0x18] sm:$0xff] %vm712_vm11, %v1591_v40  ;;  %v1104_v36 = vld [vmem:[#allocation2 + $0x28] sm:$0xff] }
 0x238   : > { %1894 = vmatmul.msk.f32.gmra.mxu0 %vm1113_vm12, %v1104_v36  ;;  %1277 = vst.msk [vmem:[#allocation2 + $0x28] sm:$0xff] %vm366_vm2, %v2922_v2 }
 0x239   : > { %v1236_v4 = vpop.f32.mrf.mxu1 }
 0x23c   : > { %v1562_v32 = vpop.permute.xlu2 %1561  ;;  %v1159_v60 = vpop.f32.mrf.mxu0 }
 0x23d   : > { %v1389_v41 = vpop.permute.xlu1 %1388  ;;  %v1228_v63 = vadd.f32 %v1227_v58, %v1159_v60 }
 0x23e   : > { %1406 = vst.msk [vmem:[#allocation2 + $0x30] sm:$0xff] %vm498_vm4, %v1389_v41  ;;  %v1385_v22 = vpop.permute.xlu0 %1384  ;;  %v1619_v42 = vld [vmem:[#allocation2 + $0x18] sm:$0xff] }
 0x23f   : > { %1404 = vst.msk [vmem:[#allocation2 + $0x20] sm:$0xff] %vm498_vm4, %v1385_v22  ;;  %1915 = vmatmul.msk.f32.gmra.mxu2 %vm1113_vm12, %v1619_v42 }
 0x240   : > { %1437 = vst.msk [vmem:[#allocation2 + $0x20] sm:$0xff] %vm532_vm5, %v1418_v49 }
 0x241   : > { %v1239_v22 = vpop.f32.mrf.mxu1 }
 0x244   : > { %v1331_v43 = vpop.permute.xlu2 %1330 }
 0x245   : > { %v1454_v44 = vpop.permute.xlu1 %1453  ;;  %1349 = vst.msk [vmem:[#allocation2 + $0x28] sm:$0xff] %vm440_vm3, %v1331_v43  ;;  %v1162_v21 = vpop.f32.mrf.mxu0 }
 0x246   : > { %1473 = vst.msk [vmem:[#allocation2 + $0x20] sm:$0xff] %vm569_vm6, %v1454_v44  ;;  %v1422_v2 = vpop.permute.xlu0 %1421  ;;  %v1231_v12 = vadd.f32 %v1230_v19, %v1162_v21 }
 0x247   : > { %1439 = vst.msk [vmem:[#allocation2 + $0x30] sm:$0xff] %vm532_vm5, %v1422_v2 }
 0x248   : > { %1475 = vst.msk [vmem:[#allocation2 + $0x30] sm:$0xff] %vm569_vm6, %v1458_v30 }
 0x249   : > { %v1242_v60 = vpop.f32.mrf.mxu1 }
 0x24c   : > { %v1391_v46 = vpop.permute.xlu2 %1390 }
 0x24d   : > { %v1493_v3 = vpop.permute.xlu1 %1492  ;;  %v1165_v26 = vpop.f32.mrf.mxu0 }
 0x24e   : > { %1510 = vst.msk [vmem:[#allocation2 + $0x30] sm:$0xff] %vm605_vm7, %v1493_v3  ;;  %v1489_v53 = vpop.permute.xlu0 %1488  ;;  %v1234_v50 = vadd.f32 %v1233_v9, %v1165_v26 }
 0x24f   : > { %1508 = vst.msk [vmem:[#allocation2 + $0x20] sm:$0xff] %vm605_vm7, %v1489_v53 }
 0x250   : > { %1541 = vst.msk [vmem:[#allocation2 + $0x20] sm:$0xff] %vm639_vm8, %v1522_v37 }
 0x254   : > { %v1456_v61 = vpop.permute.xlu2 %1455 }
 0x255   : > { %v1558_v55 = vpop.permute.xlu1 %1557 }
 0x256   : > { %1577 = vst.msk [vmem:[#allocation2 + $0x20] sm:$0xff] %vm676_vm10, %v1558_v55  ;;  %v1526_v56 = vpop.permute.xlu0 %1525 }
 0x257   : > { %1543 = vst.msk [vmem:[#allocation2 + $0x30] sm:$0xff] %vm639_vm8, %v1526_v56 }
 0x258   : > { %1579 = vst.msk [vmem:[#allocation2 + $0x30] sm:$0xff] %vm676_vm10, %v1562_v32 }
 0x25c   : > { %v1495_v5 = vpop.permute.xlu2 %1494 }
 0x25d   : > { %v1597_v57 = vpop.permute.xlu1 %1596 }
 0x25e   : > { %1614 = vst.msk [vmem:[#allocation2 + $0x30] sm:$0xff] %vm712_vm11, %v1597_v57  ;;  %v1593_v29 = vpop.permute.xlu0 %1592 }
 0x25f   : > { %1612 = vst.msk [vmem:[#allocation2 + $0x20] sm:$0xff] %vm712_vm11, %v1593_v29 }
 0x262   : > { %v1168_v49 = vpop.f32.mrf.mxu0 }
 0x263   : > { %v1237_v27 = vadd.f32 %v1236_v4, %v1168_v49 }
 0x264   : > { %v1560_v16 = vpop.permute.xlu2 %1559 }
 0x265   : > { %v1387_v14 = vpop.permute.xlu1 %1386  ;;  %v1622_v15 = vld [vmem:[#allocation2 + $0x30] sm:$0xff] }
 0x266   : > { %1405 = vst.msk [vmem:[#allocation2 + $0x28] sm:$0xff] %vm498_vm4, %v1387_v14  ;;  %v1335_v11 = vpop.permute.xlu0 %1334  ;;  %v1620_v20 = vld [vmem:[#allocation2 + $0x20] sm:$0xff]  ;;  %1918 = vmatmul.msk.f32.vlgmr.msra.gmra.mxu3 %vm1113_vm12, %v1622_v15 }
 0x267   : > { %1351 = vst.msk [vmem:[#allocation2 + $0x38] sm:$0xff] %vm440_vm3, %v1335_v11  ;;  %1916 = vmatmul.msk.f32.gmra.mxu2 %vm1113_vm12, %v1620_v20 }
 0x268   : > { %1407 = vst.msk [vmem:[#allocation2 + $0x38] sm:$0xff] %vm498_vm4, %v1391_v46 }
 0x269   : > { %v1674_v62 = vpop.f32.mrf.mxu2 }
 0x26a   : > { %v1698_v34 = vadd.f32 %v1674_v62, %v1228_v63  ;;  %v1177_v35 = vpop.f32.mrf.mxu3 }
 0x26c   : > { %v1709_v52 = vadd.f32 %v3181_v51, %v1698_v34  ;;  %v1599_v0 = vpop.permute.xlu2 %1598 }
 0x26d   : > { %v1424_v1 = vpop.permute.xlu1 %1423 }
 0x26e   : > { %v1717_v10 = vmax.f32 %v1709_v52, 0.0  ;;  %1440 = vst.msk [vmem:[#allocation2 + $0x38] sm:$0xff] %vm532_vm5, %v1424_v1  ;;  %v1420_v6 = vpop.permute.xlu0 %1419 }
 0x26f   : > { %1438 = vst.msk [vmem:[#allocation2 + $0x28] sm:$0xff] %vm532_vm5, %v1420_v6 }
 0x270   : > { %1727 = vst.msk [vmem:[%s3187_s14] sm:$0xff] %vm366_vm2, %v1717_v10 }
 0x271   : > { %1474 = vst.msk [vmem:[#allocation2 + $0x28] sm:$0xff] %vm569_vm6, %v1456_v61 }
 0x275   : > { %v1491_v13 = vpop.permute.xlu1 %1490 }
 0x276   : > { %1509 = vst.msk [vmem:[#allocation2 + $0x28] sm:$0xff] %vm605_vm7, %v1491_v13  ;;  %v1460_v59 = vpop.permute.xlu0 %1459 }
 0x277   : > { %1476 = vst.msk [vmem:[#allocation2 + $0x38] sm:$0xff] %vm569_vm6, %v1460_v59 }
 0x278   : > { %1511 = vst.msk [vmem:[#allocation2 + $0x38] sm:$0xff] %vm605_vm7, %v1495_v5 }
 0x27d   : > { %v1528_v54 = vpop.permute.xlu1 %1527 }
 0x27e   : > { %1544 = vst.msk [vmem:[#allocation2 + $0x38] sm:$0xff] %vm639_vm8, %v1528_v54  ;;  %v1524_v18 = vpop.permute.xlu0 %1523 }
 0x27f   : > { %1542 = vst.msk [vmem:[#allocation2 + $0x28] sm:$0xff] %vm639_vm8, %v1524_v18 }
 0x280   : > { %1578 = vst.msk [vmem:[#allocation2 + $0x28] sm:$0xff] %vm676_vm10, %v1560_v16 }
 0x285   : > { %v1595_v23 = vpop.permute.xlu1 %1594 }
 0x286   : > { %1613 = vst.msk [vmem:[#allocation2 + $0x28] sm:$0xff] %vm712_vm11, %v1595_v23  ;;  %v1564_v31 = vpop.permute.xlu0 %1563 }
 0x287   : > { %1580 = vst.msk [vmem:[#allocation2 + $0x38] sm:$0xff] %vm676_vm10, %v1564_v31 }
 0x288   : > { %1615 = vst.msk [vmem:[#allocation2 + $0x38] sm:$0xff] %vm712_vm11, %v1599_v0 }
 0x289   : > { %v1677_v8 = vpop.f32.mrf.mxu2 }
 0x28a   : > { %v1699_v17 = vadd.f32 %v1677_v8, %v1231_v12  ;;  %v1180_v40 = vpop.f32.mrf.mxu3 }
 0x28c   : > { %v1710_v47 = vadd.f32 %v3181_v51, %v1699_v17 }
 0x28d   : > { %v1621_v24 = vld [vmem:[#allocation2 + $0x28] sm:$0xff] }
 0x28e   : > { %v1718_v25 = vmax.f32 %v1710_v47, 0.0  ;;  %1917 = vmatmul.msk.f32.gmra.mxu2 %vm1113_vm12, %v1621_v24 }
 0x28f   : > { %v1623_v45 = vld [vmem:[#allocation2 + $0x38] sm:$0xff] }
 0x290   : > { %1728 = vst.msk [vmem:[%s3187_s14 + $0x8] sm:$0xff] %vm366_vm2, %v1718_v25  ;;  %1919 = vmatmul.msk.f32.gmra.mxu3 %vm1113_vm12, %v1623_v45 }
 0x292   : > { %v1245_v36 = vpop.f32.mrf.mxu3 }
 0x293   : > { %v1246_v42 = vadd.f32 %v1245_v36, %v1177_v35 }
 0x29a   : > { %v1248_v32 = vpop.f32.mrf.mxu3 }
 0x29b   : > { %v1171_v41 = vpop.f32.mrf.mxu0  ;;  %v1249_v11 = vadd.f32 %v1248_v32, %v1180_v40 }
 0x29c   : > { %v1240_v43 = vadd.f32 %v1239_v22, %v1171_v41 }
 0x2a3   : > { %v1680_v28 = vpop.f32.mrf.mxu2 }
 0x2a4   : > { %v1700_v38 = vadd.f32 %v1680_v28, %v1234_v50 }
 0x2a6   : > { %v1711_v7 = vadd.f32 %v3181_v51, %v1700_v38 }
 0x2a8   : > { %v1719_v48 = vmax.f32 %v1711_v7, 0.0 }
 0x2aa   : > { %1729 = vst.msk [vmem:[%s3187_s14 + $0x10] sm:$0xff] %vm366_vm2, %v1719_v48 }
 0x2b5   : > { %v1174_v29 = vpop.f32.mrf.mxu0 }
 0x2b6   : > { %v1243_v14 = vadd.f32 %v1242_v60, %v1174_v29 }
 0x2c2   : > { %v1683_v30 = vpop.f32.mrf.mxu2 }
 0x2c3   : > { %v1701_v33 = vadd.f32 %v1683_v30, %v1237_v27 }
 0x2c5   : > { %v1712_v37 = vadd.f32 %v3181_v51, %v1701_v33 }
 0x2c7   : > { %v1720_v39 = vmax.f32 %v1712_v37, 0.0 }
 0x2c9   : > { %1730 = vst.msk [vmem:[%s3187_s14 + $0x18] sm:$0xff] %vm366_vm2, %v1720_v39 }
 0x2e9   : > { %v1692_v44 = vpop.f32.mrf.mxu3 }
 0x2ea   : > { %v1686_v2 = vpop.f32.mrf.mxu2  ;;  %v1704_v3 = vadd.f32 %v1692_v44, %v1246_v42 }
 0x2eb   : > { %v1702_v53 = vadd.f32 %v1686_v2, %v1240_v43 }
 0x2ec   : > { %v1715_v55 = vadd.f32 %v3181_v51, %v1704_v3 }
 0x2ed   : > { %v1713_v56 = vadd.f32 %v3181_v51, %v1702_v53 }
 0x2ee   : > { %v1723_v57 = vmax.f32 %v1715_v55, 0.0 }
 0x2ef   : > { %v1721_v46 = vmax.f32 %v1713_v56, 0.0 }
 0x2f0   : > { %1733 = vst.msk [vmem:[%s3187_s14 + $0x30] sm:$0xff] %vm366_vm2, %v1723_v57 }
 0x2f1   : > { %1731 = vst.msk [vmem:[%s3187_s14 + $0x20] sm:$0xff] %vm366_vm2, %v1721_v46 }
 0x311   : > { %v1689_v15 = vpop.f32.mrf.mxu2 }
 0x312   : > { %v1703_v20 = vadd.f32 %v1689_v15, %v1243_v14 }
 0x313   : > { %v1695_v58 = vpop.f32.mrf.mxu3 }
 0x314   : > { %v1714_v61 = vadd.f32 %v3181_v51, %v1703_v20  ;;  %v1705_v63 = vadd.f32 %v1695_v58, %v1249_v11 }
 0x316   : > { %v1722_v62 = vmax.f32 %v1714_v61, 0.0  ;;  %v1716_v34 = vadd.f32 %v3181_v51, %v1705_v63 }
 0x318   : > { %1732 = vst.msk [vmem:[%s3187_s14 + $0x28] sm:$0xff] %vm366_vm2, %v1722_v62  ;;  %v1724_v52 = vmax.f32 %v1716_v34, 0.0 }
 0x31a   : > { %1734 = vst.msk [vmem:[%s3187_s14 + $0x38] sm:$0xff] %vm366_vm2, %v1724_v52 }
 0x31b PF: > { %s15_s22 = sadd.s32 1, %s2028_s22   ;;  %s3247_s18 = smov %s2020_s20 }
 0x31c   : > { %p12_p10 = scmp.ge.s32.totalorder %s15_s22, 18   ;;  %s3248_s19 = smov %s2024_s21 }
 0x31d   : > { %s3249_s20 = smov %s3252_s23  ;;  %s3250_s21 = smov %s3256_s24 }
 0x31e   :  { %14 = sbr.rel (!%p12_p10) target bundleno = 3 (0x3), region = 82 }

</bundles_post_ra>
